<compile_context>
chip_gen: v7x
topology: tpu7x:2x2x1
jax: 0.10.0
libtpu: 0.0.40
codegen_flags: <defaults>
</compile_context>

<pallas_src>
import functools

import jax
import jax.numpy as jnp
from jax.experimental import pallas as pl
from jax.experimental.pallas import tpu as pltpu


def _fused_mlp_kernel(x_ref, w1_ref, w2_ref, w3_ref, w4_ref, b_ref, o_ref):
    """One (tile_m, D) batch tile through all four layers.

    Weights are bf16 (resident in VMEM across grid steps); accumulation,
    bias-add and ReLU are f32; the final store casts to the output dtype.
    """
    # Static, 128-aligned bias offsets inside the concatenated bias row.
    b1 = b_ref[:, 0:1024]
    b2 = b_ref[:, 1024:1536]
    b3 = b_ref[:, 1536:1792]
    b4 = b_ref[:, 1792:]

    x = x_ref[...].astype(jnp.bfloat16)

    h = jnp.dot(x, w1_ref[...], preferred_element_type=jnp.float32)
    h = jnp.maximum(h + b1, 0.0)

    h = jnp.dot(h.astype(jnp.bfloat16), w2_ref[...],
                preferred_element_type=jnp.float32)
    h = jnp.maximum(h + b2, 0.0)

    h = jnp.dot(h.astype(jnp.bfloat16), w3_ref[...],
                preferred_element_type=jnp.float32)
    h = jnp.maximum(h + b3, 0.0)

    y = jnp.dot(h.astype(jnp.bfloat16), w4_ref[...],
                preferred_element_type=jnp.float32)
    y = y + b4

    o_ref[...] = y.astype(o_ref.dtype)


def improved_mlp(x, params, *, tile_m=512):
    """Fused forward pass: x (M, input_dim) -> (M, output_dim)."""
    (w1, b1), (w2, b2), (w3, b3), (w4, b4) = params
    M, D = x.shape
    N = w4.shape[1]

    # Weights streamed as bf16 (no-op if already bf16); biases kept f32 and
    # merged into a single lane-dense row.
    w1b = w1.astype(jnp.bfloat16)
    w2b = w2.astype(jnp.bfloat16)
    w3b = w3.astype(jnp.bfloat16)
    w4b = w4.astype(jnp.bfloat16)
    b_all = jnp.concatenate(
        [b1.astype(jnp.float32), b2.astype(jnp.float32),
         b3.astype(jnp.float32), b4.astype(jnp.float32)]
    ).reshape(1, -1)

    # Batch tile sized for v7x's 64 MiB VMEM (weights + intermediates + the
    # double-buffered x/out tiles stay well under the limit at 512 rows).
    tile_m = min(tile_m, M)
    grid = (pl.cdiv(M, tile_m),)

    flops = 2 * M * (D * 1024 + 1024 * 512 + 512 * 256 + 256 * N)
    bytes_accessed = (
        x.size * x.dtype.itemsize
        + M * N * x.dtype.itemsize
        + (w1b.size + w2b.size + w3b.size + w4b.size) * 2
        + b_all.size * 4
    )

    return pl.pallas_call(
        _fused_mlp_kernel,
        out_shape=jax.ShapeDtypeStruct((M, N), x.dtype),
        grid=grid,
        in_specs=[
            # Activations: pipelined along the batch grid axis.
            pl.BlockSpec((tile_m, D), lambda i: (i, 0)),
            # Parameters: constant block index -> DMA'd once, VMEM-resident.
            pl.BlockSpec(w1b.shape, lambda i: (0, 0)),
            pl.BlockSpec(w2b.shape, lambda i: (0, 0)),
            pl.BlockSpec(w3b.shape, lambda i: (0, 0)),
            pl.BlockSpec(w4b.shape, lambda i: (0, 0)),
            pl.BlockSpec((1, b_all.shape[1]), lambda i: (0, 0)),
        ],
        out_specs=pl.BlockSpec((tile_m, N), lambda i: (i, 0)),
        compiler_params=pltpu.CompilerParams(
            dimension_semantics=("parallel",),   # shard M across TCs on v7x
            vmem_limit_bytes=48 * 1024 * 1024,   # fits v7x's 64 MiB physical
        ),
        cost_estimate=pl.CostEstimate(
            flops=flops, transcendentals=0, bytes_accessed=bytes_accessed),
    )(x, w1b, w2b, w3b, w4b, b_all)


def init_params(key, input_dim, output_dim,
                weight_dtype=jnp.bfloat16, bias_dtype=jnp.float32):
    """nn.Linear-style init; weights stored (in, out), streamed as bf16."""
    dims = [input_dim, 1024, 512, 256, output_dim]
    params = []
    keys = jax.random.split(key, len(dims) - 1)
    for i, k in enumerate(keys):
        fan_in, fan_out = dims[i], dims[i + 1]
        bound = 1.0 / (fan_in ** 0.5)  # same scale as PyTorch default init
        wk, bk = jax.random.split(k)
        w = jax.random.uniform(wk, (fan_in, fan_out), jnp.float32, -bound, bound)
        b = jax.random.uniform(bk, (fan_out,), jnp.float32, -bound, bound)
        params.append((w.astype(weight_dtype), b.astype(bias_dtype)))
    return params


@functools.partial(jax.jit, static_argnames=("tile_m",))
def improved_mlp_forward(x, params, tile_m=512):
    return improved_mlp(x, params, tile_m=tile_m)


if __name__ == "__main__":
    key = jax.random.PRNGKey(0)
    input_dim = 128
    output_dim = 128
    batch = 8

    pkey, xkey = jax.random.split(key)
    params = init_params(pkey, input_dim, output_dim)
    x = jax.random.normal(xkey, (batch, input_dim), dtype=jnp.float32)

    y = improved_mlp_forward(x, params)
    jax.block_until_ready(y)

    # Pure-JAX reference mimicking the kernel's numerics (bf16 operands into
    # the MXU, f32 accumulation, f32 bias/ReLU).
    ref = x
    for i, (w, b) in enumerate(params):
        ref = jnp.dot(ref.astype(jnp.bfloat16), w.astype(jnp.bfloat16),
                      preferred_element_type=jnp.float32) + b
        if i < 3:
            ref = jnp.maximum(ref, 0.0)

    assert y.shape == (batch, output_dim)
    assert jnp.allclose(y, ref, atol=1e-2, rtol=1e-2), (
        float(jnp.max(jnp.abs(y - ref))))

    print("KERNEL_OK")
</pallas_src>

<mosaic_0001>
module attributes {stable_mosaic.version = 11 : i64} {
  func.func @_fused_mlp_kernel(%arg0: i32, %arg1: memref<8x128xf32, #tpu.memory_space<vmem>>, %arg2: memref<128x1024xbf16, #tpu.memory_space<vmem>>, %arg3: memref<1024x512xbf16, #tpu.memory_space<vmem>>, %arg4: memref<512x256xbf16, #tpu.memory_space<vmem>>, %arg5: memref<256x128xbf16, #tpu.memory_space<vmem>>, %arg6: memref<1x1920xf32, #tpu.memory_space<vmem>>, %arg7: memref<8x128xf32, #tpu.memory_space<vmem>>) attributes {dimension_semantics = [#tpu.dimension_semantics<parallel>], iteration_bounds = array<i64: 1>, scalar_prefetch = 0 : i64, scratch_operands = 0 : i64, tpu.core_type = #tpu.core_type<tc>, window_params = [{transform_indices = @transform_0, window_bounds = array<i64: 8, 128>}, {pipeline_mode = #tpu.pipeline_mode<synchronous>, transform_indices = @transform_1, window_bounds = array<i64: 128, 1024>}, {pipeline_mode = #tpu.pipeline_mode<synchronous>, transform_indices = @transform_2, window_bounds = array<i64: 1024, 512>}, {pipeline_mode = #tpu.pipeline_mode<synchronous>, transform_indices = @transform_3, window_bounds = array<i64: 512, 256>}, {pipeline_mode = #tpu.pipeline_mode<synchronous>, transform_indices = @transform_4, window_bounds = array<i64: 256, 128>}, {pipeline_mode = #tpu.pipeline_mode<synchronous>, transform_indices = @transform_5, window_bounds = array<i64: 1, 1920>}, {transform_indices = @transform_6, window_bounds = array<i64: 8, 128>}]} {
    %c0 = arith.constant 0 : index
    %c0_0 = arith.constant 0 : index
    %0 = vector.load %arg6[%c0, %c0_0] : memref<1x1920xf32, #tpu.memory_space<vmem>>, vector<1x1024xf32>
    %c0_1 = arith.constant 0 : index
    %c1024 = arith.constant 1024 : index
    %1 = vector.load %arg6[%c0_1, %c1024] : memref<1x1920xf32, #tpu.memory_space<vmem>>, vector<1x512xf32>
    %c0_2 = arith.constant 0 : index
    %c1536 = arith.constant 1536 : index
    %2 = vector.load %arg6[%c0_2, %c1536] : memref<1x1920xf32, #tpu.memory_space<vmem>>, vector<1x256xf32>
    %c0_3 = arith.constant 0 : index
    %c1792 = arith.constant 1792 : index
    %3 = vector.load %arg6[%c0_3, %c1792] : memref<1x1920xf32, #tpu.memory_space<vmem>>, vector<1x128xf32>
    %c0_4 = arith.constant 0 : index
    %c0_5 = arith.constant 0 : index
    %4 = vector.load %arg1[%c0_4, %c0_5] : memref<8x128xf32, #tpu.memory_space<vmem>>, vector<8x128xf32>
    %5 = arith.truncf %4 : vector<8x128xf32> to vector<8x128xbf16>
    %c0_6 = arith.constant 0 : index
    %c0_7 = arith.constant 0 : index
    %6 = vector.load %arg2[%c0_6, %c0_7] : memref<128x1024xbf16, #tpu.memory_space<vmem>>, vector<128x1024xbf16>
    %cst = arith.constant dense<0.000000e+00> : vector<8x1024xf32>
    %7 = tpu.matmul %5, %6, %cst {dimension_numbers = #tpu.dot_dimension_numbers<[1], [0], [0], [1], [0, 0, 1, 1], [], []>} : vector<8x128xbf16>, vector<128x1024xbf16>, vector<8x1024xf32> -> vector<8x1024xf32>
    %8 = vector.broadcast %0 : vector<1x1024xf32> to vector<8x1024xf32>
    %9 = arith.addf %7, %8 : vector<8x1024xf32>
    %cst_8 = arith.constant 0.000000e+00 : f32
    %10 = vector.broadcast %cst_8 : f32 to vector<8x1024xf32>
    %11 = arith.maximumf %9, %10 : vector<8x1024xf32>
    %12 = arith.truncf %11 : vector<8x1024xf32> to vector<8x1024xbf16>
    %c0_9 = arith.constant 0 : index
    %c0_10 = arith.constant 0 : index
    %13 = vector.load %arg3[%c0_9, %c0_10] : memref<1024x512xbf16, #tpu.memory_space<vmem>>, vector<1024x512xbf16>
    %cst_11 = arith.constant dense<0.000000e+00> : vector<8x512xf32>
    %14 = tpu.matmul %12, %13, %cst_11 {dimension_numbers = #tpu.dot_dimension_numbers<[1], [0], [0], [1], [0, 0, 1, 1], [], []>} : vector<8x1024xbf16>, vector<1024x512xbf16>, vector<8x512xf32> -> vector<8x512xf32>
    %15 = vector.broadcast %1 : vector<1x512xf32> to vector<8x512xf32>
    %16 = arith.addf %14, %15 : vector<8x512xf32>
    %cst_12 = arith.constant 0.000000e+00 : f32
    %17 = vector.broadcast %cst_12 : f32 to vector<8x512xf32>
    %18 = arith.maximumf %16, %17 : vector<8x512xf32>
    %19 = arith.truncf %18 : vector<8x512xf32> to vector<8x512xbf16>
    %c0_13 = arith.constant 0 : index
    %c0_14 = arith.constant 0 : index
    %20 = vector.load %arg4[%c0_13, %c0_14] : memref<512x256xbf16, #tpu.memory_space<vmem>>, vector<512x256xbf16>
    %cst_15 = arith.constant dense<0.000000e+00> : vector<8x256xf32>
    %21 = tpu.matmul %19, %20, %cst_15 {dimension_numbers = #tpu.dot_dimension_numbers<[1], [0], [0], [1], [0, 0, 1, 1], [], []>} : vector<8x512xbf16>, vector<512x256xbf16>, vector<8x256xf32> -> vector<8x256xf32>
    %22 = vector.broadcast %2 : vector<1x256xf32> to vector<8x256xf32>
    %23 = arith.addf %21, %22 : vector<8x256xf32>
    %cst_16 = arith.constant 0.000000e+00 : f32
    %24 = vector.broadcast %cst_16 : f32 to vector<8x256xf32>
    %25 = arith.maximumf %23, %24 : vector<8x256xf32>
    %26 = arith.truncf %25 : vector<8x256xf32> to vector<8x256xbf16>
    %c0_17 = arith.constant 0 : index
    %c0_18 = arith.constant 0 : index
    %27 = vector.load %arg5[%c0_17, %c0_18] : memref<256x128xbf16, #tpu.memory_space<vmem>>, vector<256x128xbf16>
    %cst_19 = arith.constant dense<0.000000e+00> : vector<8x128xf32>
    %28 = tpu.matmul %26, %27, %cst_19 {dimension_numbers = #tpu.dot_dimension_numbers<[1], [0], [0], [1], [0, 0, 1, 1], [], []>} : vector<8x256xbf16>, vector<256x128xbf16>, vector<8x128xf32> -> vector<8x128xf32>
    %29 = vector.broadcast %3 : vector<1x128xf32> to vector<8x128xf32>
    %30 = arith.addf %28, %29 : vector<8x128xf32>
    %c0_20 = arith.constant 0 : index
    %c0_21 = arith.constant 0 : index
    %31 = vector.load %arg7[%c0_20, %c0_21] : memref<8x128xf32, #tpu.memory_space<vmem>>, vector<8x128xf32>
    tpu.vector_store %arg7[%c0_20, %c0_21], %30 {strides = array<i32>} : memref<8x128xf32, #tpu.memory_space<vmem>>, vector<8x128xf32>,
    return
  }
  func.func @transform_0(%arg0: i32) -> (i32, i32) {
    %c0_i32 = arith.constant 0 : i32
    %c0_i32_0 = arith.constant 0 : i32
    return %arg0, %c0_i32 : i32, i32
  }
  func.func @transform_1(%arg0: i32) -> (i32, i32) {
    %c0_i32 = arith.constant 0 : i32
    %c0_i32_0 = arith.constant 0 : i32
    %c0_i32_1 = arith.constant 0 : i32
    return %c0_i32, %c0_i32_0 : i32, i32
  }
  func.func @transform_2(%arg0: i32) -> (i32, i32) {
    %c0_i32 = arith.constant 0 : i32
    %c0_i32_0 = arith.constant 0 : i32
    %c0_i32_1 = arith.constant 0 : i32
    return %c0_i32, %c0_i32_0 : i32, i32
  }
  func.func @transform_3(%arg0: i32) -> (i32, i32) {
    %c0_i32 = arith.constant 0 : i32
    %c0_i32_0 = arith.constant 0 : i32
    %c0_i32_1 = arith.constant 0 : i32
    return %c0_i32, %c0_i32_0 : i32, i32
  }
  func.func @transform_4(%arg0: i32) -> (i32, i32) {
    %c0_i32 = arith.constant 0 : i32
    %c0_i32_0 = arith.constant 0 : i32
    %c0_i32_1 = arith.constant 0 : i32
    return %c0_i32, %c0_i32_0 : i32, i32
  }
  func.func @transform_5(%arg0: i32) -> (i32, i32) {
    %c0_i32 = arith.constant 0 : i32
    %c0_i32_0 = arith.constant 0 : i32
    %c0_i32_1 = arith.constant 0 : i32
    return %c0_i32, %c0_i32_0 : i32, i32
  }
  func.func @transform_6(%arg0: i32) -> (i32, i32) {
    %c0_i32 = arith.constant 0 : i32
    %c0_i32_0 = arith.constant 0 : i32
    return %arg0, %c0_i32 : i32, i32
  }
}

</mosaic_0001>

<bundles_post_ra>
// kernel: improved_mlp_forward.1
= control target key start
LH: loop header
LB: loop body
LE: loop exit
PB: predicated region body
PF: predicated region fallthrough
CT: control target
= control target key end

     0   :  { %11 = vsyncpa [#allocation3], 0  ;;  %s4538_s0 = inlined_call_operand.vmem [shape: f32[8,128], index: 0, kind: input, shape index: {}]   ;;  %s4539_s1 = inlined_call_operand.hbm [shape: bf16[128,1024], index: 1, kind: input, shape index: {}]   ;;  %s4540_s2 = inlined_call_operand.hbm [shape: bf16[1024,512], index: 2, kind: input, shape index: {}]   ;;  %s4541_s3 = inlined_call_operand.hbm [shape: bf16[512,256], index: 3, kind: input, shape index: {}]   ;;  %s4542_s4 = inlined_call_operand.hbm [shape: bf16[256,128], index: 4, kind: input, shape index: {}]   ;;  %s4543_s5 = inlined_call_operand.vmem [shape: f32[1,1920], index: 5, kind: input, shape index: {}]   ;;  %s4544_s6 = inlined_call_operand.hbm [shape: f32[8,128], index: 6, kind: output, shape index: {}]  }
   0x1   :  { %12 = vsyncpa [#allocation6], 0 }
   0x2   :  { %13 = vsyncpa [#allocation9], 0 }
   0x3   :  { %14 = vsyncpa [#allocation4], 0  ;;  %s4342_s21 = smov [#allocation5]   ;;  %s4224_s25 = scalar_lea.hbm %s4540_s2, 32768 }
   0x4   :  { %s34_s22 = sshll.u32 %s4342_s21, 4  ;;  %p4225_p0 = scmp.ne.s32.totalorder %s4540_s2, %s4224_s25  ;;  %s35_s22 = int_to_ptr.vmem [resolvable:$true] %s34_s22 }
   0x5   :  { %p4228_p1 = scmp.lt.u32.totalorder %s4224_s25, %s4540_s2 }
   0x7   :  { %p4230_p2 = pnand %p4228_p1, %p4225_p0 }
   0x9   :  { %4233 = shalt.err (!%p4230_p2)
}
   0xa   :  { %s4234_s30 = scalar_lea.vmem %s35_s22, 32768  ;;  %p4239_p4 = scmp.lt.s32.totalorder %s35_s22, %s35_s22 }
   0xb   :  { %p4235_p3 = scmp.ne.s32.totalorder %s35_s22, %s4234_s30  ;;  %p4240_p5 = scmp.lt.s32.totalorder %s4234_s30, %s4234_s30 }
   0xd   :  { %p4241_p6 = por %p4240_p5, %p4239_p4 }
   0xf   :  { %p4242_p7 = pnand %p4241_p6, %p4235_p3 }
  0x11   :  { %4245 = shalt.err (!%p4242_p7)
}
  0x12   :  { %s4343_s7 = smov 256   ;;  %s4344_s8 = smov 16  }
  0x13   :  { %40 = dma.hbm_to_vmem [thread:$0]  %s4540_s2, 32768, %s35_s22, [#allocation6], %s4343_s7, %s4343_s7, %s4344_s8  }
  0x14   :  { %s4345_s11 = smov [#allocation2]   ;;  %s4246_s15 = scalar_lea.hbm %s4539_s1, 8192 }
  0x15   :  { %s22_s12 = sshll.u32 %s4345_s11, 4  ;;  %p4247_p8 = scmp.ne.s32.totalorder %s4539_s1, %s4246_s15  ;;  %s23_s12 = int_to_ptr.vmem [resolvable:$true] %s22_s12 }
  0x16   :  { %p4250_p9 = scmp.lt.u32.totalorder %s4246_s15, %s4539_s1 }
  0x18   :  { %p4252_p10 = pnand %p4250_p9, %p4247_p8 }
  0x1a   :  { %4255 = shalt.err (!%p4252_p10)
}
  0x1b   :  { %s4256_s20 = scalar_lea.vmem %s23_s12, 8192  ;;  %p4261_p12 = scmp.lt.s32.totalorder %s23_s12, %s23_s12 }
  0x1c   :  { %p4257_p11 = scmp.ne.s32.totalorder %s23_s12, %s4256_s20  ;;  %p4262_p13 = scmp.lt.s32.totalorder %s4256_s20, %s4256_s20 }
  0x1e   :  { %p4263_p0 = por %p4262_p13, %p4261_p12 }
  0x20   :  { %p4264_p1 = pnand %p4263_p0, %p4257_p11 }
  0x22   :  { %4267 = shalt.err (!%p4264_p1)
}
  0x23   :  { %s4346_s2 = smov 512   ;;  %s4347_s21 = smov 32  }
  0x24   :  { %28 = dma.hbm_to_vmem [thread:$0]  %s4539_s1, 8192, %s23_s12, [#allocation3], %s4346_s2, %s4346_s2, %s4347_s21  }
  0x25   :  { %s4348_s24 = smov [#allocation7]   ;;  %s4268_s28 = scalar_lea.hbm %s4541_s3, 8192 }
  0x26   :  { %s46_s25 = sshll.u32 %s4348_s24, 4  ;;  %p4269_p2 = scmp.ne.s32.totalorder %s4541_s3, %s4268_s28  ;;  %s47_s25 = int_to_ptr.vmem [resolvable:$true] %s46_s25 }
  0x27   :  { %p4272_p3 = scmp.lt.u32.totalorder %s4268_s28, %s4541_s3 }
  0x29   :  { %p4274_p4 = pnand %p4272_p3, %p4269_p2 }
  0x2b   :  { %4277 = shalt.err (!%p4274_p4)
}
  0x2c   :  { %s4278_s9 = scalar_lea.vmem %s47_s25, 8192  ;;  %p4283_p6 = scmp.lt.s32.totalorder %s47_s25, %s47_s25 }
  0x2d   :  { %p4279_p5 = scmp.ne.s32.totalorder %s47_s25, %s4278_s9  ;;  %p4284_p7 = scmp.lt.s32.totalorder %s4278_s9, %s4278_s9 }
  0x2f   :  { %p4285_p8 = por %p4284_p7, %p4283_p6 }
  0x31   :  { %p4286_p9 = pnand %p4285_p8, %p4279_p5 }
  0x33   :  { %4289 = shalt.err (!%p4286_p9)
}
  0x34   :  { %s4349_s1 = smov 128   ;;  %s4350_s10 = smov 8  }
  0x35   :  { %52 = dma.hbm_to_vmem [thread:$0]  %s4541_s3, 8192, %s47_s25, [#allocation6], %s4349_s1, %s4349_s1, %s4350_s10  }
  0x36   :  { %s4351_s13 = smov [#allocation8]   ;;  %s4290_s17 = scalar_lea.hbm %s4542_s4, 2048 }
  0x37   :  { %s58_s14 = sshll.u32 %s4351_s13, 4  ;;  %p4291_p10 = scmp.ne.s32.totalorder %s4542_s4, %s4290_s17  ;;  %s59_s14 = int_to_ptr.vmem [resolvable:$true] %s58_s14 }
  0x38   :  { %p4294_p11 = scmp.lt.u32.totalorder %s4290_s17, %s4542_s4 }
  0x3a   :  { %p4296_p12 = pnand %p4294_p11, %p4291_p10 }
  0x3c   :  { %4299 = shalt.err (!%p4296_p12)
}
  0x3d   :  { %s4300_s21 = scalar_lea.vmem %s59_s14, 2048  ;;  %p4305_p0 = scmp.lt.s32.totalorder %s59_s14, %s59_s14 }
  0x3e   :  { %p4301_p13 = scmp.ne.s32.totalorder %s59_s14, %s4300_s21  ;;  %p4306_p1 = scmp.lt.s32.totalorder %s4300_s21, %s4300_s21 }
  0x40   :  { %p4307_p2 = por %p4306_p1, %p4305_p0 }
  0x42   :  { %p4308_p3 = pnand %p4307_p2, %p4301_p13 }
  0x44   :  { %4311 = shalt.err (!%p4308_p3)
}
  0x45   :  { %s4352_s3 = smov 64   ;;  %s4353_s22 = smov 4  }
  0x46   :  { %64 = dma.hbm_to_vmem [thread:$0]  %s4542_s4, 2048, %s59_s14, [#allocation9], %s4352_s3, %s4352_s3, %s4353_s22  }
  0x47   :  { %4334 = dma.done.wait [#allocation3], 8192  }
  0x48   :  { %4335 = vsyncadd [#allocation3], 4294959104 }
  0x49   :  { %4336 = dma.done.wait [#allocation6], 40960  }
  0x4a   :  { %4337 = vsyncadd [#allocation6], 4294926336 }
  0x4b   :  { %4338 = dma.done.wait [#allocation9], 2048  }
  0x4c   :  { %4339 = vsyncadd [#allocation9], 4294965248  ;;  %v4354_v0 = vmov 0   ;;  %v86_v1 = vld [vmem:[#allocation2] sm:$0xff]  ;;  %v88_v18 = vld [vmem:[#allocation2 + $0x10] sm:$0xff]  ;;  %s4355_s9 = smov [#allocation10]  }
  0x4d   :  { %543 = vmatprep.mubr.bf16.mxu1 %v4354_v0  ;;  %625 = vmatprep.mubr.bf16.mxu0 %v4354_v0  ;;  %v90_v2 = vld [vmem:[#allocation2 + $0x20] sm:$0xff]  ;;  %v92_v19 = vld [vmem:[#allocation2 + $0x30] sm:$0xff]  ;;  %v87_v53 = vld [vmem:[#allocation2 + $0x8] sm:$0xff]  ;;  %s3246_s1 = sshll.u32 %s4355_s9, 4  ;;  %s3247_s1 = int_to_ptr.vmem [resolvable:$true] %s3246_s1 }
  0x4e   :  { %v94_v3 = vld [vmem:[#allocation2 + $0x40] sm:$0xff]  ;;  %v3258_v4 = vcombine.high %v86_v1, %v90_v2  ;;  %v3257_v5 = vcombine.low %v86_v1, %v90_v2  ;;  %v96_v20 = vld [vmem:[#allocation2 + $0x50] sm:$0xff]  ;;  %v3262_v22 = vcombine.high %v88_v18, %v92_v19  ;;  %v3261_v23 = vcombine.low %v88_v18, %v92_v19  ;;  %v91_v54 = vld [vmem:[#allocation2 + $0x28] sm:$0xff]  ;;  %s4312_s10 = scalar_lea.vmem %s3247_s1, 128  ;;  %p4317_p5 = scmp.lt.s32.totalorder %s3247_s1, %s3247_s1 }
  0x4f   :  { %v98_v6 = vld [vmem:[#allocation2 + $0x60] sm:$0xff]  ;;  %v100_v24 = vld [vmem:[#allocation2 + $0x70] sm:$0xff]  ;;  %v3260_v59 = vcombine.high %v87_v53, %v91_v54  ;;  %v95_v60 = vld [vmem:[#allocation2 + $0x48] sm:$0xff]  ;;  %p4313_p4 = scmp.ne.s32.totalorder %s3247_s1, %s4312_s10  ;;  %p4318_p6 = scmp.lt.s32.totalorder %s4312_s10, %s4312_s10 }
  0x50   :  { %v3266_v7 = vcombine.high %v94_v3, %v98_v6  ;;  %v102_v8 = vld [vmem:[#allocation2 + $0x80] sm:$0xff]  ;;  %511 = vmatprep.subr.bf16.mxu1 %v3258_v4  ;;  %v3265_v10 = vcombine.low %v94_v3, %v98_v6  ;;  %v3270_v26 = vcombine.high %v96_v20, %v100_v24  ;;  %v104_v27 = vld [vmem:[#allocation2 + $0x90] sm:$0xff]  ;;  %593 = vmatprep.subr.bf16.mxu0 %v3262_v22  ;;  %v99_v61 = vld [vmem:[#allocation2 + $0x68] sm:$0xff] }
  0x51   :  { %v106_v9 = vld [vmem:[#allocation2 + $0xa0] sm:$0xff]  ;;  %512 = vmatpush1.bf16.msra.mxu1 %v3257_v5  ;;  %v108_v28 = vld [vmem:[#allocation2 + $0xb0] sm:$0xff]  ;;  %594 = vmatpush1.bf16.msra.mxu0 %v3261_v23  ;;  %v3269_v31 = vcombine.low %v96_v20, %v100_v24  ;;  %v3259_v3 = vcombine.low %v87_v53, %v91_v54  ;;  %v3268_v4 = vcombine.high %v95_v60, %v99_v61  ;;  %v119_v20 = vld [vmem:[#allocation2 + $0x108] sm:$0xff]  ;;  %p4319_p7 = por %p4318_p6, %p4317_p5 }
  0x52   :  { %513 = vmatprep.subr.bf16.mxu1 %v3266_v7  ;;  %v3274_v11 = vcombine.high %v102_v8, %v106_v9  ;;  %v110_v12 = vld [vmem:[#allocation2 + $0xc0] sm:$0xff]  ;;  %v3273_v14 = vcombine.low %v102_v8, %v106_v9  ;;  %595 = vmatprep.subr.bf16.mxu0 %v3270_v26  ;;  %v3278_v33 = vcombine.high %v104_v27, %v108_v28  ;;  %v112_v35 = vld [vmem:[#allocation2 + $0xd0] sm:$0xff]  ;;  %v103_v8 = vld [vmem:[#allocation2 + $0x88] sm:$0xff] }
  0x53   :  { %v114_v13 = vld [vmem:[#allocation2 + $0xe0] sm:$0xff]  ;;  %v116_v36 = vld [vmem:[#allocation2 + $0xf0] sm:$0xff]  ;;  %v3277_v39 = vcombine.low %v104_v27, %v108_v28  ;;  %v107_v9 = vld [vmem:[#allocation2 + $0xa8] sm:$0xff]  ;;  %p4320_p8 = pnand %p4319_p7, %p4313_p4 }
  0x54   :  { %v3282_v15 = vcombine.high %v110_v12, %v114_v13  ;;  %v118_v16 = vld [vmem:[#allocation2 + $0x100] sm:$0xff]  ;;  %v3281_v21 = vcombine.low %v110_v12, %v114_v13  ;;  %v3286_v41 = vcombine.high %v112_v35, %v116_v36  ;;  %v120_v43 = vld [vmem:[#allocation2 + $0x110] sm:$0xff]  ;;  %v3285_v47 = vcombine.low %v112_v35, %v116_v36  ;;  %v127_v26 = vld [vmem:[#allocation2 + $0x148] sm:$0xff] }
  0x55   :  { %514 = vmatpush1.bf16.msra.mxu1 %v3265_v10  ;;  %v122_v17 = vld [vmem:[#allocation2 + $0x120] sm:$0xff]  ;;  %596 = vmatpush1.bf16.msra.mxu0 %v3269_v31  ;;  %v124_v44 = vld [vmem:[#allocation2 + $0x130] sm:$0xff]  ;;  %v3276_v13 = vcombine.high %v103_v8, %v107_v9  ;;  %v131_v27 = vld [vmem:[#allocation2 + $0x168] sm:$0xff] }
  0x56   :  { %515 = vmatprep.subr.bf16.mxu1 %v3274_v11  ;;  %v3290_v25 = vcombine.high %v118_v16, %v122_v17  ;;  %v126_v29 = vld [vmem:[#allocation2 + $0x140] sm:$0xff]  ;;  %v3289_v32 = vcombine.low %v118_v16, %v122_v17  ;;  %597 = vmatprep.subr.bf16.mxu0 %v3278_v33  ;;  %v3294_v49 = vcombine.high %v120_v43, %v124_v44  ;;  %v128_v51 = vld [vmem:[#allocation2 + $0x150] sm:$0xff]  ;;  %v139_v33 = vld [vmem:[#allocation2 + $0x1a8] sm:$0xff] }
  0x57   :  { %v130_v30 = vld [vmem:[#allocation2 + $0x160] sm:$0xff]  ;;  %v132_v52 = vld [vmem:[#allocation2 + $0x170] sm:$0xff]  ;;  %v3293_v55 = vcombine.low %v120_v43, %v124_v44  ;;  %v3267_v11 = vcombine.low %v95_v60, %v99_v61  ;;  %v3275_v17 = vcombine.low %v103_v8, %v107_v9  ;;  %v3300_v31 = vcombine.high %v127_v26, %v131_v27  ;;  %v89_v44 = vld [vmem:[#allocation2 + $0x18] sm:$0xff] }
  0x58   :  { %v3298_v34 = vcombine.high %v126_v29, %v130_v30  ;;  %v134_v37 = vld [vmem:[#allocation2 + $0x180] sm:$0xff]  ;;  %v3297_v40 = vcombine.low %v126_v29, %v130_v30  ;;  %v3302_v58 = vcombine.high %v128_v51, %v132_v52  ;;  %v136_v62 = vld [vmem:[#allocation2 + $0x190] sm:$0xff]  ;;  %v3301_v2 = vcombine.low %v128_v51, %v132_v52  ;;  %v113_v61 = vld [vmem:[#allocation2 + $0xd8] sm:$0xff] }
  0x59   :  { %516 = vmatpush1.bf16.msra.mxu1 %v3273_v14  ;;  %v138_v38 = vld [vmem:[#allocation2 + $0x1a0] sm:$0xff]  ;;  %598 = vmatpush1.bf16.msra.mxu0 %v3277_v39  ;;  %v140_v63 = vld [vmem:[#allocation2 + $0x1b0] sm:$0xff]  ;;  %v111_v14 = vld [vmem:[#allocation2 + $0xc8] sm:$0xff]  ;;  %v3299_v35 = vcombine.low %v127_v26, %v131_v27 }
  0x5a   :  { %517 = vmatprep.subr.bf16.mxu1 %v3282_v15  ;;  %v3306_v42 = vcombine.high %v134_v37, %v138_v38  ;;  %v142_v45 = vld [vmem:[#allocation2 + $0x1c0] sm:$0xff]  ;;  %v3305_v48 = vcombine.low %v134_v37, %v138_v38  ;;  %599 = vmatprep.subr.bf16.mxu0 %v3286_v41  ;;  %v3310_v5 = vcombine.high %v136_v62, %v140_v63  ;;  %v144_v6 = vld [vmem:[#allocation2 + $0x1d0] sm:$0xff]  ;;  %v115_v15 = vld [vmem:[#allocation2 + $0xe8] sm:$0xff] }
  0x5b   :  { %v146_v46 = vld [vmem:[#allocation2 + $0x1e0] sm:$0xff]  ;;  %v148_v7 = vld [vmem:[#allocation2 + $0x1f0] sm:$0xff]  ;;  %v3309_v10 = vcombine.low %v136_v62, %v140_v63  ;;  %v3284_v19 = vcombine.high %v111_v14, %v115_v15  ;;  %v3283_v23 = vcombine.low %v111_v14, %v115_v15  ;;  %v143_v38 = vld [vmem:[#allocation2 + $0x1c8] sm:$0xff] }
  0x5c   :  { %v3314_v50 = vcombine.high %v142_v45, %v146_v46  ;;  %v3313_v56 = vcombine.low %v142_v45, %v146_v46  ;;  %v84_v57 = vld [vmem:[%s4538_s0] sm:$0xff]  ;;  %v3318_v12 = vcombine.high %v144_v6, %v148_v7  ;;  %v3317_v16 = vcombine.low %v144_v6, %v148_v7  ;;  %v147_v39 = vld [vmem:[#allocation2 + $0x1e8] sm:$0xff]  ;;  %v93_v45 = vld [vmem:[#allocation2 + $0x38] sm:$0xff] }
  0x5d   :  { %518 = vmatpush1.bf16.msra.mxu1 %v3281_v21  ;;  %600 = vmatpush1.bf16.msra.mxu0 %v3285_v47  ;;  %v4444_v1 = vpack.c.bf16 %v84_v57, %v84_v57  ;;  %v3730_v18 = vld [vmem:[#allocation5 + $0x4] ss:$16 sps:$4 sm:$0xff]   ;;  %v123_v21 = vld [vmem:[#allocation2 + $0x128] sm:$0xff]  ;;  %v3728_v22 = vld [vmem:[#allocation5] ss:$16 sps:$4 sm:$0xff]   ;;  %v3316_v43 = vcombine.high %v143_v38, %v147_v39  ;;  %v3264_v51 = vcombine.high %v89_v44, %v93_v45 }
  0x5e   :  { %519 = vmatprep.subr.bf16.mxu1 %v3290_v25  ;;  %601 = vmatprep.subr.bf16.mxu0 %v3294_v49  ;;  %v3736_v24 = vld [vmem:[#allocation5 + $0x24] ss:$16 sps:$4 sm:$0xff]   ;;  %v3292_v25 = vcombine.high %v119_v20, %v123_v21  ;;  %v3734_v28 = vld [vmem:[#allocation5 + $0x20] ss:$16 sps:$4 sm:$0xff]   ;;  %v3291_v29 = vcombine.low %v119_v20, %v123_v21  ;;  %v97_v49 = vld [vmem:[#allocation2 + $0x58] sm:$0xff]  ;;  %v3263_v54 = vcombine.low %v89_v44, %v93_v45 }
  0x5f   :  { %v3742_v30 = vld [vmem:[#allocation5 + $0x44] ss:$16 sps:$4 sm:$0xff]   ;;  %v3752_v46 = vld [vmem:[#allocation5 + $0x80] ss:$16 sps:$4 sm:$0xff]   ;;  %v117_v62 = vld [vmem:[#allocation2 + $0xf8] sm:$0xff] }
  0x60   :  { %v3748_v36 = vld [vmem:[#allocation5 + $0x64] ss:$16 sps:$4 sm:$0xff]   ;;  %v3758_v52 = vld [vmem:[#allocation5 + $0xa0] ss:$16 sps:$4 sm:$0xff]   ;;  %v125_v6 = vld [vmem:[#allocation2 + $0x138] sm:$0xff]  ;;  %v3288_v7 = vcombine.high %v113_v61, %v117_v62 }
  0x61   :  { %520 = vmatpush1.bf16.msra.mxu1 %v3289_v32  ;;  %602 = vmatpush1.bf16.msra.mxu0 %v3293_v55  ;;  %v135_v32 = vld [vmem:[#allocation2 + $0x188] sm:$0xff]  ;;  %v3760_v47 = vld [vmem:[#allocation5 + $0xa4] ss:$16 sps:$4 sm:$0xff]   ;;  %v105_v55 = vld [vmem:[#allocation2 + $0x98] sm:$0xff] }
  0x62   :  { %521 = vmatprep.subr.bf16.mxu1 %v3298_v34  ;;  %603 = vmatprep.subr.bf16.mxu0 %v3302_v58  ;;  %v3740_v34 = vld [vmem:[#allocation5 + $0x40] ss:$16 sps:$4 sm:$0xff]   ;;  %v3308_v37 = vcombine.high %v135_v32, %v139_v33  ;;  %v3307_v41 = vcombine.low %v135_v32, %v139_v33  ;;  %v3766_v53 = vld [vmem:[#allocation5 + $0xc4] ss:$16 sps:$4 sm:$0xff]   ;;  %v3761_v44 = vld [vmem:[#allocation5 + $0xa8] ss:$16 sps:$4 sm:$0xff]  }
  0x63   :  { %v3764_v58 = vld [vmem:[#allocation5 + $0xc0] ss:$16 sps:$4 sm:$0xff]   ;;  %v3784_v9 = vld [vmem:[#allocation5 + $0x124] ss:$16 sps:$4 sm:$0xff]  }
  0x64   :  { %v3776_v8 = vld [vmem:[#allocation5 + $0x100] ss:$16 sps:$4 sm:$0xff]   ;;  %v3790_v14 = vld [vmem:[#allocation5 + $0x144] ss:$16 sps:$4 sm:$0xff]  }
  0x65   :  { %522 = vmatpush1.bf16.msra.mxu1 %v3297_v40  ;;  %604 = vmatpush1.bf16.msra.mxu0 %v3301_v2  ;;  %v3746_v40 = vld [vmem:[#allocation5 + $0x60] ss:$16 sps:$4 sm:$0xff]   ;;  %v3796_v20 = vld [vmem:[#allocation5 + $0x164] ss:$16 sps:$4 sm:$0xff]  }
  0x66   :  { %523 = vmatprep.subr.bf16.mxu1 %v3306_v42  ;;  %605 = vmatprep.subr.bf16.mxu0 %v3310_v5  ;;  %v3754_v42 = vld [vmem:[#allocation5 + $0x84] ss:$16 sps:$4 sm:$0xff]   ;;  %v3770_v2 = vld [vmem:[#allocation5 + $0xe0] ss:$16 sps:$4 sm:$0xff]   ;;  %v121_v5 = vld [vmem:[#allocation2 + $0x118] sm:$0xff] }
  0x67   :  { %v3295_v15 = vcombine.low %v121_v5, %v125_v6  ;;  %v3802_v26 = vld [vmem:[#allocation5 + $0x184] ss:$16 sps:$4 sm:$0xff]   ;;  %v3806_v33 = vld [vmem:[#allocation5 + $0x1a0] ss:$16 sps:$4 sm:$0xff]  }
  0x68   :  { %v3814_v45 = vld [vmem:[#allocation5 + $0x1c4] ss:$16 sps:$4 sm:$0xff]  }
  0x69   :  { %524 = vmatpush1.bf16.msra.mxu1 %v3305_v48  ;;  %606 = vmatpush1.bf16.msra.mxu0 %v3309_v10  ;;  %v3315_v48 = vcombine.low %v143_v38, %v147_v39  ;;  %v3287_v10 = vcombine.low %v113_v61, %v117_v62  ;;  %v3743_v38 = vld [vmem:[#allocation5 + $0x48] ss:$16 sps:$4 sm:$0xff]   ;;  %v3751_v39 = vld [vmem:[#allocation5 + $0x6c] ss:$16 sps:$4 sm:$0xff]  }
  0x6a   :  { %525 = vmatprep.subr.bf16.mxu1 %v3314_v50  ;;  %607 = vmatprep.subr.bf16.mxu0 %v3318_v12  ;;  %v101_v50 = vld [vmem:[#allocation2 + $0x78] sm:$0xff]  ;;  %v3296_v12 = vcombine.high %v121_v5, %v125_v6 }
  0x6b   :  { %v3272_v57 = vcombine.high %v97_v49, %v101_v50  ;;  %v3271_v60 = vcombine.low %v97_v49, %v101_v50  ;;  %v3775_v49 = vld [vmem:[#allocation5 + $0xec] ss:$16 sps:$4 sm:$0xff]   ;;  %v3818_v50 = vld [vmem:[#allocation5 + $0x1e0] ss:$16 sps:$4 sm:$0xff]   ;;  %v3803_v62 = vld [vmem:[#allocation5 + $0x188] ss:$16 sps:$4 sm:$0xff]  }
  0x6c   :  { %v3805_v61 = vld [vmem:[#allocation5 + $0x18c] ss:$16 sps:$4 sm:$0xff]   ;;  %v3821_v6 = vld [vmem:[#allocation5 + $0x1e8] ss:$16 sps:$4 sm:$0xff]  }
  0x6d   :  { %526 = vmatpush1.bf16.msra.mxu1 %v3313_v56  ;;  %608 = vmatpush1.bf16.msra.mxu0 %v3317_v16  ;;  %v109_v56 = vld [vmem:[#allocation2 + $0xb8] sm:$0xff] }
  0x6e   :  { %552 = vmatprep.subr.bf16.mxu1 %v3260_v59  ;;  %2248 = vmatprep.subr.bf16.mxu0 %v3730_v18  ;;  %v3772_v59 = vld [vmem:[#allocation5 + $0xe4] ss:$16 sps:$4 sm:$0xff]   ;;  %v3280_v63 = vcombine.high %v105_v55, %v109_v56  ;;  %v137_v16 = vld [vmem:[#allocation2 + $0x198] sm:$0xff] }
  0x6f   :  { %v3823_v5 = vld [vmem:[#allocation5 + $0x1ec] ss:$16 sps:$4 sm:$0xff]  }
  0x70   :  { %544 = vmatmul.mubr.bf16.vlgmr.msra.gmra.mrb[0].mxu1 %v4444_v1  ;;  %626 = vmatmul.mubr.bf16.vlgmr.msra.gmra.mrb[0].mxu0 %v4444_v1 }
  0x71   :  { %553 = vmatpush1.bf16.msra.mxu1 %v3259_v3  ;;  %584 = vmatprep.mubr.bf16.mxu1 %v4354_v0  ;;  %v3778_v3 = vld [vmem:[#allocation5 + $0x104] ss:$16 sps:$4 sm:$0xff]  }
  0x72   :  { %554 = vmatprep.subr.bf16.mxu1 %v3268_v4  ;;  %2249 = vmatpush1.bf16.msra.mxu0 %v3728_v22  ;;  %v3279_v4 = vcombine.low %v105_v55, %v109_v56  ;;  %v145_v22 = vld [vmem:[#allocation2 + $0x1d8] sm:$0xff] }
  0x73   :  { %2250 = vmatprep.subr.bf16.mxu0 %v3736_v24  ;;  %v3787_v55 = vld [vmem:[#allocation5 + $0x12c] ss:$16 sps:$4 sm:$0xff]   ;;  %v3785_v56 = vld [vmem:[#allocation5 + $0x128] ss:$16 sps:$4 sm:$0xff]  }
  0x75   :  { %555 = vmatpush1.bf16.msra.mxu1 %v3267_v11  ;;  %v129_v11 = vld [vmem:[#allocation2 + $0x158] sm:$0xff] }
  0x76   :  { %556 = vmatprep.subr.bf16.mxu1 %v3276_v13  ;;  %2251 = vmatpush1.bf16.msra.mxu0 %v3734_v28  ;;  %v3782_v13 = vld [vmem:[#allocation5 + $0x120] ss:$16 sps:$4 sm:$0xff]  }
  0x77   :  { %2252 = vmatprep.subr.bf16.mxu0 %v3742_v30  ;;  %v3808_v30 = vld [vmem:[#allocation5 + $0x1a4] ss:$16 sps:$4 sm:$0xff]  }
  0x79   :  { %557 = vmatpush1.bf16.msra.mxu1 %v3275_v17  ;;  %v141_v17 = vld [vmem:[#allocation2 + $0x1b8] sm:$0xff] }
  0x7a   :  { %558 = vmatprep.subr.bf16.mxu1 %v3284_v19  ;;  %2253 = vmatpush1.bf16.msra.mxu0 %v3740_v34  ;;  %v3788_v19 = vld [vmem:[#allocation5 + $0x140] ss:$16 sps:$4 sm:$0xff]   ;;  %v3312_v24 = vcombine.high %v137_v16, %v141_v17  ;;  %v3311_v27 = vcombine.low %v137_v16, %v141_v17  ;;  %v3731_v34 = vld [vmem:[#allocation5 + $0x8] ss:$16 sps:$4 sm:$0xff]  }
  0x7b   :  { %2254 = vmatprep.subr.bf16.mxu0 %v3748_v36  ;;  %v3737_v36 = vld [vmem:[#allocation5 + $0x28] ss:$16 sps:$4 sm:$0xff]  }
  0x7d   :  { %559 = vmatpush1.bf16.msra.mxu1 %v3283_v23  ;;  %v149_v23 = vld [vmem:[#allocation2 + $0x1f8] sm:$0xff] }
  0x7e   :  { %560 = vmatprep.subr.bf16.mxu1 %v3292_v25  ;;  %2255 = vmatpush1.bf16.msra.mxu0 %v3746_v40  ;;  %v3794_v25 = vld [vmem:[#allocation5 + $0x160] ss:$16 sps:$4 sm:$0xff]   ;;  %v3320_v28 = vcombine.high %v145_v22, %v149_v23  ;;  %v3319_v32 = vcombine.low %v145_v22, %v149_v23  ;;  %v3749_v40 = vld [vmem:[#allocation5 + $0x68] ss:$16 sps:$4 sm:$0xff]  }
  0x7f   :  { %2256 = vmatprep.subr.bf16.mxu0 %v3754_v42  ;;  %v3755_v42 = vld [vmem:[#allocation5 + $0x88] ss:$16 sps:$4 sm:$0xff]   ;;  %v3824_v23 = vld [vmem:[#allocation5 + $0x200] ss:$16 sps:$4 sm:$0xff]  }
  0x81   :  { %561 = vmatpush1.bf16.msra.mxu1 %v3291_v29  ;;  %v3800_v29 = vld [vmem:[#allocation5 + $0x180] ss:$16 sps:$4 sm:$0xff]  }
  0x82   :  { %562 = vmatprep.subr.bf16.mxu1 %v3300_v31  ;;  %2257 = vmatpush1.bf16.msra.mxu0 %v3752_v46  ;;  %v3733_v31 = vld [vmem:[#allocation5 + $0xc] ss:$16 sps:$4 sm:$0xff]   ;;  %v3812_v46 = vld [vmem:[#allocation5 + $0x1c0] ss:$16 sps:$4 sm:$0xff]  }
  0x83   :  { %2258 = vmatprep.subr.bf16.mxu0 %v3760_v47  ;;  %v3767_v47 = vld [vmem:[#allocation5 + $0xc8] ss:$16 sps:$4 sm:$0xff]  }
  0x85   :  { %563 = vmatpush1.bf16.msra.mxu1 %v3299_v35  ;;  %v3739_v35 = vld [vmem:[#allocation5 + $0x2c] ss:$16 sps:$4 sm:$0xff]  }
  0x86   :  { %564 = vmatprep.subr.bf16.mxu1 %v3308_v37  ;;  %2259 = vmatpush1.bf16.msra.mxu0 %v3758_v52  ;;  %v3745_v37 = vld [vmem:[#allocation5 + $0x4c] ss:$16 sps:$4 sm:$0xff]   ;;  %v3826_v52 = vld [vmem:[#allocation5 + $0x204] ss:$16 sps:$4 sm:$0xff]  }
  0x87   :  { %2260 = vmatprep.subr.bf16.mxu0 %v3766_v53  ;;  %v3781_v53 = vld [vmem:[#allocation5 + $0x10c] ss:$16 sps:$4 sm:$0xff]  }
  0x89   :  { %565 = vmatpush1.bf16.msra.mxu1 %v3307_v41  ;;  %v3757_v41 = vld [vmem:[#allocation5 + $0x8c] ss:$16 sps:$4 sm:$0xff]  }
  0x8a   :  { %566 = vmatprep.subr.bf16.mxu1 %v3316_v43  ;;  %2261 = vmatpush1.bf16.msra.mxu0 %v3764_v58  ;;  %v3763_v43 = vld [vmem:[#allocation5 + $0xac] ss:$16 sps:$4 sm:$0xff]   ;;  %v3791_v58 = vld [vmem:[#allocation5 + $0x148] ss:$16 sps:$4 sm:$0xff]  }
  0x8b   :  { %2262 = vmatprep.subr.bf16.mxu0 %v3772_v59  ;;  %v3799_v59 = vld [vmem:[#allocation5 + $0x16c] ss:$16 sps:$4 sm:$0xff]  }
  0x8d   :  { %567 = vmatpush1.bf16.msra.mxu1 %v3315_v48  ;;  %v3820_v48 = vld [vmem:[#allocation5 + $0x1e4] ss:$16 sps:$4 sm:$0xff]  }
  0x8e   :  { %634 = vmatprep.subr.bf16.mxu1 %v3264_v51  ;;  %2263 = vmatpush1.bf16.msra.mxu0 %v3770_v2  ;;  %v3773_v51 = vld [vmem:[#allocation5 + $0xe8] ss:$16 sps:$4 sm:$0xff]  }
  0x8f   :  { %2264 = vmatprep.subr.bf16.mxu0 %v3778_v3  ;;  %v3809_v2 = vld [vmem:[#allocation5 + $0x1a8] ss:$16 sps:$4 sm:$0xff]   ;;  %v3817_v3 = vld [vmem:[#allocation5 + $0x1cc] ss:$16 sps:$4 sm:$0xff]  }
  0x90   :  { %585 = vmatmul.mubr.bf16.vlgmr.msra.gmra.mrb[4].mxu1 %v4444_v1 }
  0x91   :  { %635 = vmatpush1.bf16.msra.mxu1 %v3263_v54  ;;  %666 = vmatprep.mubr.bf16.mxu1 %v4354_v0  ;;  %v133_v0 = vld [vmem:[#allocation2 + $0x178] sm:$0xff] }
  0x92   :  { %636 = vmatprep.subr.bf16.mxu1 %v3272_v57  ;;  %2265 = vmatpush1.bf16.msra.mxu0 %v3776_v8  ;;  %v3304_v18 = vcombine.high %v129_v11, %v133_v0  ;;  %v3303_v21 = vcombine.low %v129_v11, %v133_v0  ;;  %v3779_v54 = vld [vmem:[#allocation5 + $0x108] ss:$16 sps:$4 sm:$0xff]   ;;  %v3793_v57 = vld [vmem:[#allocation5 + $0x14c] ss:$16 sps:$4 sm:$0xff]   ;;  %v151_v8 = vlaneseq  ;;  %v4460_v11 = vld [vmem:[%s4543_s5] sm:$0xff] }
  0x93   :  { %2266 = vmatprep.subr.bf16.mxu0 %v3784_v9 }
  0x94   :  { %v4452_v9 = vshrl.u32 %v151_v8, 7  ;;  %v3880_v8 = vld [vmem:[#allocation5 + $0x324] ss:$16 sps:$4 sm:$0xff]  }
  0x95   :  { %637 = vmatpush1.bf16.msra.mxu1 %v3271_v60  ;;  %v3797_v60 = vld [vmem:[#allocation5 + $0x168] ss:$16 sps:$4 sm:$0xff]  }
  0x96   :  { %638 = vmatprep.subr.bf16.mxu1 %v3280_v63  ;;  %2267 = vmatpush1.bf16.msra.mxu0 %v3782_v13  ;;  %v3811_v63 = vld [vmem:[#allocation5 + $0x1ac] ss:$16 sps:$4 sm:$0xff]   ;;  %v4463_v0 = vsub.s32 1, %v4452_v9 }
  0x97   :  { %2268 = vmatprep.subr.bf16.mxu0 %v3790_v14 }
  0x98   :  { %v158_v13 = vrot.slane %v4460_v11, %v4463_v0 }
  0x99   :  { %639 = vmatpush1.bf16.msra.mxu1 %v3279_v4  ;;  %v3815_v4 = vld [vmem:[#allocation5 + $0x1c8] ss:$16 sps:$4 sm:$0xff]  }
  0x9a   :  { %640 = vmatprep.subr.bf16.mxu1 %v3288_v7  ;;  %2269 = vmatpush1.bf16.msra.mxu0 %v3788_v19  ;;  %v3829_v7 = vld [vmem:[#allocation5 + $0x20c] ss:$16 sps:$4 sm:$0xff]  }
  0x9b   :  { %2270 = vmatprep.subr.bf16.mxu0 %v3796_v20 }
  0x9d   :  { %641 = vmatpush1.bf16.msra.mxu1 %v3287_v10  ;;  %v4455_v10 = vsub.s32 0, %v4452_v9 }
  0x9e   :  { %642 = vmatprep.subr.bf16.mxu1 %v3296_v12  ;;  %2271 = vmatpush1.bf16.msra.mxu0 %v3794_v25 }
  0x9f   :  { %2272 = vmatprep.subr.bf16.mxu0 %v3802_v26  ;;  %v154_v12 = vrot.slane %v4460_v11, %v4455_v10  ;;  %v3832_v26 = vld [vmem:[#allocation5 + $0x224] ss:$16 sps:$4 sm:$0xff]  }
  0xa1   :  { %643 = vmatpush1.bf16.msra.mxu1 %v3295_v15 }
  0xa2   :  { %644 = vmatprep.subr.bf16.mxu1 %v3304_v18  ;;  %2273 = vmatpush1.bf16.msra.mxu0 %v3800_v29  ;;  %v3833_v29 = vld [vmem:[#allocation5 + $0x228] ss:$16 sps:$4 sm:$0xff]  }
  0xa3   :  { %2274 = vmatprep.subr.bf16.mxu0 %v3808_v30  ;;  %v3838_v30 = vld [vmem:[#allocation5 + $0x244] ss:$16 sps:$4 sm:$0xff]  }
  0xa5   :  { %645 = vmatpush1.bf16.msra.mxu1 %v3303_v21 }
  0xa6   :  { %646 = vmatprep.subr.bf16.mxu1 %v3312_v24  ;;  %2275 = vmatpush1.bf16.msra.mxu0 %v3806_v33  ;;  %v3827_v24 = vld [vmem:[#allocation5 + $0x208] ss:$16 sps:$4 sm:$0xff]  }
  0xa7   :  { %2276 = vmatprep.subr.bf16.mxu0 %v3814_v45  ;;  %v3851_v45 = vld [vmem:[#allocation5 + $0x288] ss:$16 sps:$4 sm:$0xff]  }
  0xa9   :  { %647 = vmatpush1.bf16.msra.mxu1 %v3311_v27  ;;  %v3835_v27 = vld [vmem:[#allocation5 + $0x22c] ss:$16 sps:$4 sm:$0xff]  }
  0xaa   :  { %648 = vmatprep.subr.bf16.mxu1 %v3320_v28  ;;  %2277 = vmatpush1.bf16.msra.mxu0 %v3812_v46  ;;  %v3830_v28 = vld [vmem:[#allocation5 + $0x220] ss:$16 sps:$4 sm:$0xff]   ;;  %v3859_v46 = vld [vmem:[#allocation5 + $0x2ac] ss:$16 sps:$4 sm:$0xff]  }
  0xab   :  { %2278 = vmatprep.subr.bf16.mxu0 %v3820_v48  ;;  %v3857_v48 = vld [vmem:[#allocation5 + $0x2a8] ss:$16 sps:$4 sm:$0xff]  }
  0xad   :  { %649 = vmatpush1.bf16.msra.mxu1 %v3319_v32 }
  0xae   :  { %2412 = vmatprep.subr.bf16.mxu1 %v3733_v31  ;;  %2279 = vmatpush1.bf16.msra.mxu0 %v3818_v50  ;;  %v3841_v31 = vld [vmem:[#allocation5 + $0x24c] ss:$16 sps:$4 sm:$0xff]   ;;  %v3862_v50 = vld [vmem:[#allocation5 + $0x2c4] ss:$16 sps:$4 sm:$0xff]  }
  0xaf   :  { %2289 = vmatprep.subr.bf16.mxu0 %v3826_v52  ;;  %v3860_v52 = vld [vmem:[#allocation5 + $0x2c0] ss:$16 sps:$4 sm:$0xff]  }
  0xb0   :  { %667 = vmatmul.mubr.bf16.vlgmr.msra.gmra.mrb[8].mxu1 %v4444_v1  ;;  %v3769_v1 = vld [vmem:[#allocation5 + $0xcc] ss:$16 sps:$4 sm:$0xff]  }
  0xb1   :  { %2413 = vmatpush1.bf16.msra.mxu1 %v3731_v34 }
  0xb2   :  { %2414 = vmatprep.subr.bf16.mxu1 %v3739_v35  ;;  %v3836_v35 = vld [vmem:[#allocation5 + $0x240] ss:$16 sps:$4 sm:$0xff]  }
  0xb5   :  { %2415 = vmatpush1.bf16.msra.mxu1 %v3737_v36  ;;  %v3839_v36 = vld [vmem:[#allocation5 + $0x248] ss:$16 sps:$4 sm:$0xff]  }
  0xb6   :  { %2416 = vmatprep.subr.bf16.mxu1 %v3745_v37 }
  0xb9   :  { %2417 = vmatpush1.bf16.msra.mxu1 %v3743_v38  ;;  %v3844_v38 = vld [vmem:[#allocation5 + $0x264] ss:$16 sps:$4 sm:$0xff]  }
  0xba   :  { %2418 = vmatprep.subr.bf16.mxu1 %v3751_v39  ;;  %v3847_v39 = vld [vmem:[#allocation5 + $0x26c] ss:$16 sps:$4 sm:$0xff]  }
  0xbd   :  { %2419 = vmatpush1.bf16.msra.mxu1 %v3749_v40  ;;  %v3842_v40 = vld [vmem:[#allocation5 + $0x260] ss:$16 sps:$4 sm:$0xff]  }
  0xbe   :  { %2420 = vmatprep.subr.bf16.mxu1 %v3757_v41  ;;  %v3845_v41 = vld [vmem:[#allocation5 + $0x268] ss:$16 sps:$4 sm:$0xff]  }
  0xc1   :  { %2421 = vmatpush1.bf16.msra.mxu1 %v3755_v42  ;;  %v3850_v42 = vld [vmem:[#allocation5 + $0x284] ss:$16 sps:$4 sm:$0xff]  }
  0xc2   :  { %2422 = vmatprep.subr.bf16.mxu1 %v3763_v43  ;;  %v3853_v43 = vld [vmem:[#allocation5 + $0x28c] ss:$16 sps:$4 sm:$0xff]  }
  0xc5   :  { %2423 = vmatpush1.bf16.msra.mxu1 %v3761_v44  ;;  %v3848_v44 = vld [vmem:[#allocation5 + $0x280] ss:$16 sps:$4 sm:$0xff]  }
  0xc6   :  { %2424 = vmatprep.subr.bf16.mxu1 %v3769_v1  ;;  %v3856_v1 = vld [vmem:[#allocation5 + $0x2a4] ss:$16 sps:$4 sm:$0xff]  }
  0xc9   :  { %2425 = vmatpush1.bf16.msra.mxu1 %v3767_v47  ;;  %v3854_v47 = vld [vmem:[#allocation5 + $0x2a0] ss:$16 sps:$4 sm:$0xff]  }
  0xca   :  { %2426 = vmatprep.subr.bf16.mxu1 %v3775_v49  ;;  %v165_v49 = vsub.s32 3, %v4452_v9 }
  0xcd   :  { %2427 = vmatpush1.bf16.msra.mxu1 %v3773_v51  ;;  %v3865_v51 = vld [vmem:[#allocation5 + $0x2cc] ss:$16 sps:$4 sm:$0xff]  }
  0xce   :  { %2428 = vmatprep.subr.bf16.mxu1 %v3781_v53  ;;  %v3863_v53 = vld [vmem:[#allocation5 + $0x2c8] ss:$16 sps:$4 sm:$0xff]  }
  0xd1   :  { %2429 = vmatpush1.bf16.msra.mxu1 %v3779_v54  ;;  %v166_v54 = vrot.slane %v4460_v11, %v165_v49 }
  0xd2   :  { %2430 = vmatprep.subr.bf16.mxu1 %v3787_v55  ;;  %v3868_v55 = vld [vmem:[#allocation5 + $0x2e4] ss:$16 sps:$4 sm:$0xff]  }
  0xd5   :  { %2431 = vmatpush1.bf16.msra.mxu1 %v3785_v56  ;;  %v3871_v56 = vld [vmem:[#allocation5 + $0x2ec] ss:$16 sps:$4 sm:$0xff]  }
  0xd6   :  { %2432 = vmatprep.subr.bf16.mxu1 %v3793_v57 }
  0xd9   :  { %2433 = vmatpush1.bf16.msra.mxu1 %v3791_v58 }
  0xda   :  { %2434 = vmatprep.subr.bf16.mxu1 %v3799_v59  ;;  %v3866_v59 = vld [vmem:[#allocation5 + $0x2e0] ss:$16 sps:$4 sm:$0xff]  }
  0xdd   :  { %2435 = vmatpush1.bf16.msra.mxu1 %v3797_v60  ;;  %v3869_v60 = vld [vmem:[#allocation5 + $0x2e8] ss:$16 sps:$4 sm:$0xff]  }
  0xde   :  { %2436 = vmatprep.subr.bf16.mxu1 %v3805_v61 }
  0xe1   :  { %2437 = vmatpush1.bf16.msra.mxu1 %v3803_v62 }
  0xe2   :  { %2438 = vmatprep.subr.bf16.mxu1 %v3811_v63  ;;  %v3874_v63 = vld [vmem:[#allocation5 + $0x304] ss:$16 sps:$4 sm:$0xff]  }
  0xe5   :  { %2439 = vmatpush1.bf16.msra.mxu1 %v3809_v2  ;;  %v3877_v2 = vld [vmem:[#allocation5 + $0x30c] ss:$16 sps:$4 sm:$0xff]  }
  0xe6   :  { %2440 = vmatprep.subr.bf16.mxu1 %v3817_v3 }
  0xe9   :  { %2441 = vmatpush1.bf16.msra.mxu1 %v3815_v4 }
  0xea   :  { %2442 = vmatprep.subr.bf16.mxu1 %v3823_v5  ;;  %v3872_v5 = vld [vmem:[#allocation5 + $0x300] ss:$16 sps:$4 sm:$0xff]  }
  0xed   :  { %2443 = vmatpush1.bf16.msra.mxu1 %v3821_v6  ;;  %v3875_v6 = vld [vmem:[#allocation5 + $0x308] ss:$16 sps:$4 sm:$0xff]  }
  0xee   :  { %2453 = vmatprep.subr.bf16.mxu1 %v3829_v7 }
 0x143   :  { %v545_v14 = vpop.f32.mrb[0].mxu1  ;;  %v4469_v32 = vpop.f32.mrb[0].mxu0 }
 0x144   :  { %v546_v15 = vadd.f32 %v545_v14, %v154_v12  ;;  %v547_v16 = vpop.f32.mrb[1].mxu1  ;;  %v4471_v33 = vpop.f32.mrb[1].mxu0  ;;  %v3883_v12 = vld [vmem:[#allocation5 + $0x32c] ss:$16 sps:$4 sm:$0xff]   ;;  %v3881_v14 = vld [vmem:[#allocation5 + $0x328] ss:$16 sps:$4 sm:$0xff]  }
 0x145   :  { %v548_v17 = vadd.f32 %v547_v16, %v158_v13  ;;  %v549_v18 = vpop.f32.mrb[2].mxu1  ;;  %v631_v34 = vpop.f32.mrb[2].mxu0  ;;  %v3878_v13 = vld [vmem:[#allocation5 + $0x320] ss:$16 sps:$4 sm:$0xff]   ;;  %v3889_v16 = vld [vmem:[#allocation5 + $0x34c] ss:$16 sps:$4 sm:$0xff]  }
 0x146   :  { %v675_v19 = vmax.f32 %v546_v15, 0.0  ;;  %v550_v20 = vpop.f32.mrb[3].mxu1  ;;  %v632_v37 = vpop.f32.mrb[3].mxu0  ;;  %v3886_v15 = vld [vmem:[#allocation5 + $0x344] ss:$16 sps:$4 sm:$0xff]  }
 0x147   :  { %v676_v21 = vmax.f32 %v548_v17, 0.0  ;;  %v3884_v17 = vld [vmem:[#allocation5 + $0x340] ss:$16 sps:$4 sm:$0xff]   ;;  %v3887_v18 = vld [vmem:[#allocation5 + $0x348] ss:$16 sps:$4 sm:$0xff]  }
 0x148   :  { %v683_v25 = vpack.c.bf16 %v675_v19, %v675_v19  ;;  %v3892_v19 = vld [vmem:[#allocation5 + $0x364] ss:$16 sps:$4 sm:$0xff]   ;;  %v3895_v20 = vld [vmem:[#allocation5 + $0x36c] ss:$16 sps:$4 sm:$0xff]   ;;  %v3902_v34 = vld [vmem:[#allocation5 + $0x3a0] ss:$16 sps:$4 sm:$0xff]  }
 0x149   :  { %v684_v22 = vpack.c.bf16 %v676_v21, %v676_v21  ;;  %v3890_v21 = vld [vmem:[#allocation5 + $0x360] ss:$16 sps:$4 sm:$0xff]   ;;  %v3913_v37 = vld [vmem:[#allocation5 + $0x3cc] ss:$16 sps:$4 sm:$0xff]  }
 0x14b   :  { %2280 = vmatprep.mubr.bf16.mxu0 %v684_v22  ;;  %2444 = vmatprep.mubr.bf16.mxu1 %v684_v22  ;;  %v3893_v22 = vld [vmem:[#allocation5 + $0x368] ss:$16 sps:$4 sm:$0xff]  }
 0x14c   :  { %2281 = vmatmul.mubr.bf16.vlgmr.msra.gmra.mrb[4].mxu0 %v683_v25  ;;  %2445 = vmatmul.mubr.bf16.vlgmr.msra.gmra.mrb[12].mxu1 %v683_v25  ;;  %v161_v25 = vsub.s32 2, %v4452_v9 }
 0x14d   :  { %2290 = vmatpush1.bf16.msra.mxu0 %v3824_v23  ;;  %2454 = vmatpush1.bf16.msra.mxu1 %v3827_v24  ;;  %v3898_v23 = vld [vmem:[#allocation5 + $0x384] ss:$16 sps:$4 sm:$0xff]   ;;  %v3901_v24 = vld [vmem:[#allocation5 + $0x38c] ss:$16 sps:$4 sm:$0xff]  }
 0x14e   :  { %2291 = vmatprep.subr.bf16.mxu0 %v3832_v26  ;;  %2455 = vmatprep.subr.bf16.mxu1 %v3835_v27  ;;  %v3896_v26 = vld [vmem:[#allocation5 + $0x380] ss:$16 sps:$4 sm:$0xff]   ;;  %v3899_v27 = vld [vmem:[#allocation5 + $0x388] ss:$16 sps:$4 sm:$0xff]  }
 0x151   :  { %2292 = vmatpush1.bf16.msra.mxu0 %v3830_v28  ;;  %2456 = vmatpush1.bf16.msra.mxu1 %v3833_v29  ;;  %v3904_v28 = vld [vmem:[#allocation5 + $0x3a4] ss:$16 sps:$4 sm:$0xff]   ;;  %v3907_v29 = vld [vmem:[#allocation5 + $0x3ac] ss:$16 sps:$4 sm:$0xff]  }
 0x152   :  { %2293 = vmatprep.subr.bf16.mxu0 %v3838_v30  ;;  %2457 = vmatprep.subr.bf16.mxu1 %v3841_v31  ;;  %v173_v30 = vsub.s32 5, %v4452_v9  ;;  %v162_v31 = vrot.slane %v4460_v11, %v161_v25 }
 0x155   :  { %2294 = vmatpush1.bf16.msra.mxu0 %v3836_v35  ;;  %2458 = vmatpush1.bf16.msra.mxu1 %v3839_v36  ;;  %v3905_v35 = vld [vmem:[#allocation5 + $0x3a8] ss:$16 sps:$4 sm:$0xff]   ;;  %v3910_v36 = vld [vmem:[#allocation5 + $0x3c4] ss:$16 sps:$4 sm:$0xff]  }
 0x156   :  { %2295 = vmatprep.subr.bf16.mxu0 %v3844_v38  ;;  %2459 = vmatprep.subr.bf16.mxu1 %v3847_v39  ;;  %v174_v38 = vrot.slane %v4460_v11, %v173_v30  ;;  %v3968_v30 = vld [vmem:[#allocation5 + $0x500] ss:$16 sps:$4 sm:$0xff]  }
 0x159   :  { %2296 = vmatpush1.bf16.msra.mxu0 %v3842_v40  ;;  %2460 = vmatpush1.bf16.msra.mxu1 %v3845_v41  ;;  %v3908_v40 = vld [vmem:[#allocation5 + $0x3c0] ss:$16 sps:$4 sm:$0xff]   ;;  %v3911_v41 = vld [vmem:[#allocation5 + $0x3c8] ss:$16 sps:$4 sm:$0xff]  }
 0x15a   :  { %2297 = vmatprep.subr.bf16.mxu0 %v3850_v42  ;;  %2461 = vmatprep.subr.bf16.mxu1 %v3853_v43  ;;  %v3916_v42 = vld [vmem:[#allocation5 + $0x3e4] ss:$16 sps:$4 sm:$0xff]   ;;  %v3919_v43 = vld [vmem:[#allocation5 + $0x3ec] ss:$16 sps:$4 sm:$0xff]  }
 0x15d   :  { %2298 = vmatpush1.bf16.msra.mxu0 %v3848_v44  ;;  %2462 = vmatpush1.bf16.msra.mxu1 %v3851_v45  ;;  %v630_v44 = vadd.f32 %v4471_v33, %v174_v38  ;;  %v3920_v33 = vld [vmem:[#allocation5 + $0x400] ss:$16 sps:$4 sm:$0xff]   ;;  %v3982_v38 = vld [vmem:[#allocation5 + $0x544] ss:$16 sps:$4 sm:$0xff]  }
 0x15e   :  { %2299 = vmatprep.subr.bf16.mxu0 %v3856_v1  ;;  %2463 = vmatprep.subr.bf16.mxu1 %v3859_v46 }
 0x161   :  { %2300 = vmatpush1.bf16.msra.mxu0 %v3854_v47  ;;  %2464 = vmatpush1.bf16.msra.mxu1 %v3857_v48  ;;  %v3914_v47 = vld [vmem:[#allocation5 + $0x3e0] ss:$16 sps:$4 sm:$0xff]   ;;  %v3917_v48 = vld [vmem:[#allocation5 + $0x3e8] ss:$16 sps:$4 sm:$0xff]  }
 0x162   :  { %2301 = vmatprep.subr.bf16.mxu0 %v3862_v50  ;;  %2465 = vmatprep.subr.bf16.mxu1 %v3865_v51  ;;  %v3922_v51 = vld [vmem:[#allocation5 + $0x404] ss:$16 sps:$4 sm:$0xff]  }
 0x163   :  { %v4477_v57 = vpop.f32.mrb[4].mxu1 }
 0x164   :  { %v588_v58 = vpop.f32.mrb[5].mxu1  ;;  %v587_v39 = vadd.f32 %v4477_v57, %v162_v31  ;;  %v3928_v57 = vld [vmem:[#allocation5 + $0x424] ss:$16 sps:$4 sm:$0xff]   ;;  %v3971_v31 = vld [vmem:[#allocation5 + $0x508] ss:$16 sps:$4 sm:$0xff]  }
 0x165   :  { %2302 = vmatpush1.bf16.msra.mxu0 %v3860_v52  ;;  %2466 = vmatpush1.bf16.msra.mxu1 %v3863_v53  ;;  %v589_v61 = vadd.f32 %v588_v58, %v166_v54  ;;  %v590_v62 = vpop.f32.mrb[6].mxu1  ;;  %v3925_v52 = vld [vmem:[#allocation5 + $0x40c] ss:$16 sps:$4 sm:$0xff]   ;;  %v680_v54 = vmax.f32 %v630_v44, 0.0  ;;  %v3986_v44 = vld [vmem:[#allocation5 + $0x560] ss:$16 sps:$4 sm:$0xff]  }
 0x166   :  { %2303 = vmatprep.subr.bf16.mxu0 %v3868_v55  ;;  %2467 = vmatprep.subr.bf16.mxu1 %v3871_v56  ;;  %v591_v3 = vpop.f32.mrb[7].mxu1  ;;  %v677_v1 = vmax.f32 %v587_v39, 0.0  ;;  %v3923_v56 = vld [vmem:[#allocation5 + $0x408] ss:$16 sps:$4 sm:$0xff]   ;;  %v3931_v58 = vld [vmem:[#allocation5 + $0x42c] ss:$16 sps:$4 sm:$0xff]  }
 0x167   :  { %v678_v4 = vmax.f32 %v589_v61, 0.0  ;;  %v3929_v61 = vld [vmem:[#allocation5 + $0x428] ss:$16 sps:$4 sm:$0xff]   ;;  %v3934_v62 = vld [vmem:[#allocation5 + $0x444] ss:$16 sps:$4 sm:$0xff]  }
 0x168   :  { %v685_v55 = vpack.c.bf16 %v677_v1, %v677_v1  ;;  %v3935_v3 = vld [vmem:[#allocation5 + $0x448] ss:$16 sps:$4 sm:$0xff]   ;;  %v3985_v39 = vld [vmem:[#allocation5 + $0x54c] ss:$16 sps:$4 sm:$0xff]  }
 0x169   :  { %2304 = vmatpush1.bf16.msra.mxu0 %v3866_v59  ;;  %2468 = vmatpush1.bf16.msra.mxu1 %v3869_v60  ;;  %v686_v7 = vpack.c.bf16 %v678_v4, %v678_v4  ;;  %v688_v59 = vpack.c.bf16 %v680_v54, %v680_v54  ;;  %v3926_v60 = vld [vmem:[#allocation5 + $0x420] ss:$16 sps:$4 sm:$0xff]   ;;  %v3940_v4 = vld [vmem:[#allocation5 + $0x464] ss:$16 sps:$4 sm:$0xff]   ;;  %v3989_v1 = vld [vmem:[#allocation5 + $0x568] ss:$16 sps:$4 sm:$0xff]  }
 0x16a   :  { %2305 = vmatprep.subr.bf16.mxu0 %v3874_v63  ;;  %2469 = vmatprep.subr.bf16.mxu1 %v3877_v2  ;;  %v3937_v63 = vld [vmem:[#allocation5 + $0x44c] ss:$16 sps:$4 sm:$0xff]   ;;  %v3932_v2 = vld [vmem:[#allocation5 + $0x440] ss:$16 sps:$4 sm:$0xff]  }
 0x16b   :  { %2321 = vmatprep.mubr.bf16.mxu0 %v686_v7  ;;  %2485 = vmatprep.mubr.bf16.mxu1 %v686_v7  ;;  %v3941_v7 = vld [vmem:[#allocation5 + $0x468] ss:$16 sps:$4 sm:$0xff]   ;;  %v4003_v54 = vld [vmem:[#allocation5 + $0x5ac] ss:$16 sps:$4 sm:$0xff]  }
 0x16d   :  { %2306 = vmatpush1.bf16.msra.mxu0 %v3872_v5  ;;  %2470 = vmatpush1.bf16.msra.mxu1 %v3875_v6  ;;  %v3943_v5 = vld [vmem:[#allocation5 + $0x46c] ss:$16 sps:$4 sm:$0xff]   ;;  %v3938_v6 = vld [vmem:[#allocation5 + $0x460] ss:$16 sps:$4 sm:$0xff]  }
 0x16e   :  { %2307 = vmatprep.subr.bf16.mxu0 %v3880_v8  ;;  %2471 = vmatprep.subr.bf16.mxu1 %v3883_v12  ;;  %v3946_v8 = vld [vmem:[#allocation5 + $0x484] ss:$16 sps:$4 sm:$0xff]   ;;  %v3949_v12 = vld [vmem:[#allocation5 + $0x48c] ss:$16 sps:$4 sm:$0xff]  }
 0x171   :  { %2308 = vmatpush1.bf16.msra.mxu0 %v3878_v13  ;;  %2472 = vmatpush1.bf16.msra.mxu1 %v3881_v14  ;;  %v3944_v13 = vld [vmem:[#allocation5 + $0x480] ss:$16 sps:$4 sm:$0xff]   ;;  %v3947_v14 = vld [vmem:[#allocation5 + $0x488] ss:$16 sps:$4 sm:$0xff]  }
 0x172   :  { %2309 = vmatprep.subr.bf16.mxu0 %v3886_v15  ;;  %2473 = vmatprep.subr.bf16.mxu1 %v3889_v16  ;;  %v3952_v15 = vld [vmem:[#allocation5 + $0x4a4] ss:$16 sps:$4 sm:$0xff]   ;;  %v3955_v16 = vld [vmem:[#allocation5 + $0x4ac] ss:$16 sps:$4 sm:$0xff]  }
 0x175   :  { %2310 = vmatpush1.bf16.msra.mxu0 %v3884_v17  ;;  %2474 = vmatpush1.bf16.msra.mxu1 %v3887_v18  ;;  %v3950_v17 = vld [vmem:[#allocation5 + $0x4a0] ss:$16 sps:$4 sm:$0xff]   ;;  %v3953_v18 = vld [vmem:[#allocation5 + $0x4a8] ss:$16 sps:$4 sm:$0xff]  }
 0x176   :  { %2311 = vmatprep.subr.bf16.mxu0 %v3892_v19  ;;  %2475 = vmatprep.subr.bf16.mxu1 %v3895_v20  ;;  %v3958_v19 = vld [vmem:[#allocation5 + $0x4c4] ss:$16 sps:$4 sm:$0xff]   ;;  %v3961_v20 = vld [vmem:[#allocation5 + $0x4cc] ss:$16 sps:$4 sm:$0xff]  }
 0x179   :  { %2312 = vmatpush1.bf16.msra.mxu0 %v3890_v21  ;;  %2476 = vmatpush1.bf16.msra.mxu1 %v3893_v22  ;;  %v3956_v21 = vld [vmem:[#allocation5 + $0x4c0] ss:$16 sps:$4 sm:$0xff]   ;;  %v3959_v22 = vld [vmem:[#allocation5 + $0x4c8] ss:$16 sps:$4 sm:$0xff]  }
 0x17a   :  { %2313 = vmatprep.subr.bf16.mxu0 %v3898_v23  ;;  %2477 = vmatprep.subr.bf16.mxu1 %v3901_v24  ;;  %v3964_v23 = vld [vmem:[#allocation5 + $0x4e4] ss:$16 sps:$4 sm:$0xff]   ;;  %v3967_v24 = vld [vmem:[#allocation5 + $0x4ec] ss:$16 sps:$4 sm:$0xff]  }
 0x17d   :  { %2314 = vmatpush1.bf16.msra.mxu0 %v3896_v26  ;;  %2478 = vmatpush1.bf16.msra.mxu1 %v3899_v27  ;;  %v3962_v26 = vld [vmem:[#allocation5 + $0x4e0] ss:$16 sps:$4 sm:$0xff]   ;;  %v3965_v27 = vld [vmem:[#allocation5 + $0x4e8] ss:$16 sps:$4 sm:$0xff]  }
 0x17e   :  { %2315 = vmatprep.subr.bf16.mxu0 %v3904_v28  ;;  %2479 = vmatprep.subr.bf16.mxu1 %v3907_v29  ;;  %v3970_v28 = vld [vmem:[#allocation5 + $0x504] ss:$16 sps:$4 sm:$0xff]   ;;  %v3973_v29 = vld [vmem:[#allocation5 + $0x50c] ss:$16 sps:$4 sm:$0xff]  }
 0x181   :  { %2316 = vmatpush1.bf16.msra.mxu0 %v3902_v34  ;;  %2480 = vmatpush1.bf16.msra.mxu1 %v3905_v35  ;;  %v3976_v34 = vld [vmem:[#allocation5 + $0x524] ss:$16 sps:$4 sm:$0xff]   ;;  %v3979_v35 = vld [vmem:[#allocation5 + $0x52c] ss:$16 sps:$4 sm:$0xff]  }
 0x182   :  { %2317 = vmatprep.subr.bf16.mxu0 %v3910_v36  ;;  %2481 = vmatprep.subr.bf16.mxu1 %v3913_v37  ;;  %v3974_v36 = vld [vmem:[#allocation5 + $0x520] ss:$16 sps:$4 sm:$0xff]   ;;  %v3977_v37 = vld [vmem:[#allocation5 + $0x528] ss:$16 sps:$4 sm:$0xff]  }
 0x183   :  { %v4487_v45 = vpop.f32.mrb[8].mxu1 }
 0x184   :  { %v4489_v46 = vpop.f32.mrb[9].mxu1 }
 0x185   :  { %2318 = vmatpush1.bf16.msra.mxu0 %v3908_v40  ;;  %2482 = vmatpush1.bf16.msra.mxu1 %v3911_v41  ;;  %v672_v50 = vpop.f32.mrb[10].mxu1  ;;  %v3980_v40 = vld [vmem:[#allocation5 + $0x540] ss:$16 sps:$4 sm:$0xff]   ;;  %v3983_v41 = vld [vmem:[#allocation5 + $0x548] ss:$16 sps:$4 sm:$0xff]  }
 0x186   :  { %2319 = vmatprep.subr.bf16.mxu0 %v3916_v42  ;;  %2483 = vmatprep.subr.bf16.mxu1 %v3919_v43  ;;  %v673_v53 = vpop.f32.mrb[11].mxu1  ;;  %v3988_v42 = vld [vmem:[#allocation5 + $0x564] ss:$16 sps:$4 sm:$0xff]   ;;  %v3991_v43 = vld [vmem:[#allocation5 + $0x56c] ss:$16 sps:$4 sm:$0xff]   ;;  %v169_v50 = vsub.s32 4, %v4452_v9 }
 0x187   :  { %v4000_v53 = vld [vmem:[#allocation5 + $0x5a4] ss:$16 sps:$4 sm:$0xff]  }
 0x189   :  { %2320 = vmatpush1.bf16.msra.mxu0 %v3914_v47  ;;  %2484 = vmatpush1.bf16.msra.mxu1 %v3917_v48  ;;  %v3994_v47 = vld [vmem:[#allocation5 + $0x584] ss:$16 sps:$4 sm:$0xff]   ;;  %v3997_v48 = vld [vmem:[#allocation5 + $0x58c] ss:$16 sps:$4 sm:$0xff]  }
 0x18a   :  { %2330 = vmatprep.subr.bf16.mxu0 %v3922_v51  ;;  %2494 = vmatprep.subr.bf16.mxu1 %v3925_v52  ;;  %v3992_v51 = vld [vmem:[#allocation5 + $0x580] ss:$16 sps:$4 sm:$0xff]   ;;  %v3995_v52 = vld [vmem:[#allocation5 + $0x588] ss:$16 sps:$4 sm:$0xff]  }
 0x18c   :  { %2322 = vmatmul.mubr.bf16.vlgmr.msra.gmra.mrb[4].mxu0 %v685_v55  ;;  %2486 = vmatmul.mubr.bf16.vlgmr.msra.gmra.mrb[12].mxu1 %v685_v55  ;;  %v181_v55 = vsub.s32 7, %v4452_v9 }
 0x18d   :  { %2331 = vmatpush1.bf16.msra.mxu0 %v3920_v33  ;;  %2495 = vmatpush1.bf16.msra.mxu1 %v3923_v56  ;;  %v170_v33 = vrot.slane %v4460_v11, %v169_v50  ;;  %v3998_v56 = vld [vmem:[#allocation5 + $0x5a0] ss:$16 sps:$4 sm:$0xff]   ;;  %v4069_v50 = vld [vmem:[#allocation5 + $0x70c] ss:$16 sps:$4 sm:$0xff]  }
 0x18e   :  { %2332 = vmatprep.subr.bf16.mxu0 %v3928_v57  ;;  %2496 = vmatprep.subr.bf16.mxu1 %v3931_v58  ;;  %v4001_v57 = vld [vmem:[#allocation5 + $0x5a8] ss:$16 sps:$4 sm:$0xff]   ;;  %v4006_v58 = vld [vmem:[#allocation5 + $0x5c4] ss:$16 sps:$4 sm:$0xff]  }
 0x18f   :  { %2362 = vmatprep.mubr.bf16.mxu0 %v688_v59  ;;  %2526 = vmatprep.mubr.bf16.mxu1 %v688_v59  ;;  %v4009_v59 = vld [vmem:[#allocation5 + $0x5cc] ss:$16 sps:$4 sm:$0xff]  }
 0x191   :  { %2333 = vmatpush1.bf16.msra.mxu0 %v3926_v60  ;;  %2497 = vmatpush1.bf16.msra.mxu1 %v3929_v61  ;;  %v182_v60 = vrot.slane %v4460_v11, %v181_v55  ;;  %v628_v61 = vadd.f32 %v4469_v32, %v170_v33  ;;  %v4070_v55 = vld [vmem:[#allocation5 + $0x720] ss:$16 sps:$4 sm:$0xff]   ;;  %v4073_v33 = vld [vmem:[#allocation5 + $0x728] ss:$16 sps:$4 sm:$0xff]  }
 0x192   :  { %2334 = vmatprep.subr.bf16.mxu0 %v3934_v62  ;;  %2498 = vmatprep.subr.bf16.mxu1 %v3937_v63  ;;  %v4004_v62 = vld [vmem:[#allocation5 + $0x5c0] ss:$16 sps:$4 sm:$0xff]   ;;  %v4007_v63 = vld [vmem:[#allocation5 + $0x5c8] ss:$16 sps:$4 sm:$0xff]  }
 0x195   :  { %2335 = vmatpush1.bf16.msra.mxu0 %v3932_v2  ;;  %2499 = vmatpush1.bf16.msra.mxu1 %v3935_v3  ;;  %v4012_v2 = vld [vmem:[#allocation5 + $0x5e4] ss:$16 sps:$4 sm:$0xff]   ;;  %v4015_v3 = vld [vmem:[#allocation5 + $0x5ec] ss:$16 sps:$4 sm:$0xff]  }
 0x196   :  { %2336 = vmatprep.subr.bf16.mxu0 %v3940_v4  ;;  %2500 = vmatprep.subr.bf16.mxu1 %v3943_v5  ;;  %v671_v4 = vadd.f32 %v4489_v46, %v182_v60  ;;  %v679_v5 = vmax.f32 %v628_v61, 0.0  ;;  %v4084_v60 = vld [vmem:[#allocation5 + $0x764] ss:$16 sps:$4 sm:$0xff]   ;;  %v4087_v61 = vld [vmem:[#allocation5 + $0x76c] ss:$16 sps:$4 sm:$0xff]  }
 0x198   :  { %v682_v32 = vmax.f32 %v671_v4, 0.0  ;;  %v4088_v4 = vld [vmem:[#allocation5 + $0x780] ss:$16 sps:$4 sm:$0xff]  }
 0x199   :  { %2337 = vmatpush1.bf16.msra.mxu0 %v3938_v6  ;;  %2501 = vmatpush1.bf16.msra.mxu1 %v3941_v7  ;;  %v4010_v6 = vld [vmem:[#allocation5 + $0x5e0] ss:$16 sps:$4 sm:$0xff]   ;;  %v4013_v7 = vld [vmem:[#allocation5 + $0x5e8] ss:$16 sps:$4 sm:$0xff]  }
 0x19a   :  { %2338 = vmatprep.subr.bf16.mxu0 %v3946_v8  ;;  %2502 = vmatprep.subr.bf16.mxu1 %v3949_v12  ;;  %v4018_v8 = vld [vmem:[#allocation5 + $0x604] ss:$16 sps:$4 sm:$0xff]   ;;  %v4021_v12 = vld [vmem:[#allocation5 + $0x60c] ss:$16 sps:$4 sm:$0xff]   ;;  %v690_v46 = vpack.c.bf16 %v682_v32, %v682_v32  ;;  %v4097_v32 = vld [vmem:[#allocation5 + $0x7a8] ss:$16 sps:$4 sm:$0xff]  }
 0x19d   :  { %2339 = vmatpush1.bf16.msra.mxu0 %v3944_v13  ;;  %2503 = vmatpush1.bf16.msra.mxu1 %v3947_v14  ;;  %v687_v13 = vpack.c.bf16 %v679_v5, %v679_v5  ;;  %v4016_v14 = vld [vmem:[#allocation5 + $0x600] ss:$16 sps:$4 sm:$0xff]   ;;  %v4091_v5 = vld [vmem:[#allocation5 + $0x788] ss:$16 sps:$4 sm:$0xff]  }
 0x19e   :  { %2340 = vmatprep.subr.bf16.mxu0 %v3952_v15  ;;  %2504 = vmatprep.subr.bf16.mxu1 %v3955_v16  ;;  %v4019_v15 = vld [vmem:[#allocation5 + $0x608] ss:$16 sps:$4 sm:$0xff]   ;;  %v4024_v16 = vld [vmem:[#allocation5 + $0x624] ss:$16 sps:$4 sm:$0xff]  }
 0x1a1   :  { %2341 = vmatpush1.bf16.msra.mxu0 %v3950_v17  ;;  %2505 = vmatpush1.bf16.msra.mxu1 %v3953_v18  ;;  %v4027_v17 = vld [vmem:[#allocation5 + $0x62c] ss:$16 sps:$4 sm:$0xff]   ;;  %v4022_v18 = vld [vmem:[#allocation5 + $0x620] ss:$16 sps:$4 sm:$0xff]  }
 0x1a2   :  { %2342 = vmatprep.subr.bf16.mxu0 %v3958_v19  ;;  %2506 = vmatprep.subr.bf16.mxu1 %v3961_v20  ;;  %v4025_v19 = vld [vmem:[#allocation5 + $0x628] ss:$16 sps:$4 sm:$0xff]   ;;  %v4030_v20 = vld [vmem:[#allocation5 + $0x644] ss:$16 sps:$4 sm:$0xff]  }
 0x1a5   :  { %2343 = vmatpush1.bf16.msra.mxu0 %v3956_v21  ;;  %2507 = vmatpush1.bf16.msra.mxu1 %v3959_v22  ;;  %v4033_v21 = vld [vmem:[#allocation5 + $0x64c] ss:$16 sps:$4 sm:$0xff]   ;;  %v4028_v22 = vld [vmem:[#allocation5 + $0x640] ss:$16 sps:$4 sm:$0xff]  }
 0x1a6   :  { %2344 = vmatprep.subr.bf16.mxu0 %v3964_v23  ;;  %2508 = vmatprep.subr.bf16.mxu1 %v3967_v24  ;;  %v4031_v23 = vld [vmem:[#allocation5 + $0x648] ss:$16 sps:$4 sm:$0xff]   ;;  %v4036_v24 = vld [vmem:[#allocation5 + $0x664] ss:$16 sps:$4 sm:$0xff]  }
 0x1a9   :  { %2345 = vmatpush1.bf16.msra.mxu0 %v3962_v26  ;;  %2509 = vmatpush1.bf16.msra.mxu1 %v3965_v27  ;;  %v4039_v26 = vld [vmem:[#allocation5 + $0x66c] ss:$16 sps:$4 sm:$0xff]   ;;  %v4034_v27 = vld [vmem:[#allocation5 + $0x660] ss:$16 sps:$4 sm:$0xff]  }
 0x1aa   :  { %2346 = vmatprep.subr.bf16.mxu0 %v3970_v28  ;;  %2510 = vmatprep.subr.bf16.mxu1 %v3973_v29  ;;  %v4037_v28 = vld [vmem:[#allocation5 + $0x668] ss:$16 sps:$4 sm:$0xff]   ;;  %v4042_v29 = vld [vmem:[#allocation5 + $0x684] ss:$16 sps:$4 sm:$0xff]  }
 0x1ad   :  { %2347 = vmatpush1.bf16.msra.mxu0 %v3968_v30  ;;  %2511 = vmatpush1.bf16.msra.mxu1 %v3971_v31  ;;  %v4045_v30 = vld [vmem:[#allocation5 + $0x68c] ss:$16 sps:$4 sm:$0xff]   ;;  %v4040_v31 = vld [vmem:[#allocation5 + $0x680] ss:$16 sps:$4 sm:$0xff]  }
 0x1ae   :  { %2348 = vmatprep.subr.bf16.mxu0 %v3976_v34  ;;  %2512 = vmatprep.subr.bf16.mxu1 %v3979_v35  ;;  %v4043_v34 = vld [vmem:[#allocation5 + $0x688] ss:$16 sps:$4 sm:$0xff]   ;;  %v4048_v35 = vld [vmem:[#allocation5 + $0x6a4] ss:$16 sps:$4 sm:$0xff]  }
 0x1b1   :  { %2349 = vmatpush1.bf16.msra.mxu0 %v3974_v36  ;;  %2513 = vmatpush1.bf16.msra.mxu1 %v3977_v37  ;;  %v4051_v36 = vld [vmem:[#allocation5 + $0x6ac] ss:$16 sps:$4 sm:$0xff]   ;;  %v4046_v37 = vld [vmem:[#allocation5 + $0x6a0] ss:$16 sps:$4 sm:$0xff]  }
 0x1b2   :  { %2350 = vmatprep.subr.bf16.mxu0 %v3982_v38  ;;  %2514 = vmatprep.subr.bf16.mxu1 %v3985_v39  ;;  %v4049_v38 = vld [vmem:[#allocation5 + $0x6a8] ss:$16 sps:$4 sm:$0xff]   ;;  %v4054_v39 = vld [vmem:[#allocation5 + $0x6c4] ss:$16 sps:$4 sm:$0xff]  }
 0x1b5   :  { %2351 = vmatpush1.bf16.msra.mxu0 %v3980_v40  ;;  %2515 = vmatpush1.bf16.msra.mxu1 %v3983_v41  ;;  %v4057_v40 = vld [vmem:[#allocation5 + $0x6cc] ss:$16 sps:$4 sm:$0xff]   ;;  %v4052_v41 = vld [vmem:[#allocation5 + $0x6c0] ss:$16 sps:$4 sm:$0xff]  }
 0x1b6   :  { %2352 = vmatprep.subr.bf16.mxu0 %v3988_v42  ;;  %2516 = vmatprep.subr.bf16.mxu1 %v3991_v43  ;;  %v4055_v42 = vld [vmem:[#allocation5 + $0x6c8] ss:$16 sps:$4 sm:$0xff]   ;;  %v4060_v43 = vld [vmem:[#allocation5 + $0x6e4] ss:$16 sps:$4 sm:$0xff]  }
 0x1b9   :  { %2353 = vmatpush1.bf16.msra.mxu0 %v3986_v44  ;;  %2517 = vmatpush1.bf16.msra.mxu1 %v3989_v1  ;;  %v4063_v44 = vld [vmem:[#allocation5 + $0x6ec] ss:$16 sps:$4 sm:$0xff]   ;;  %v4058_v1 = vld [vmem:[#allocation5 + $0x6e0] ss:$16 sps:$4 sm:$0xff]  }
 0x1ba   :  { %2354 = vmatprep.subr.bf16.mxu0 %v3994_v47  ;;  %2518 = vmatprep.subr.bf16.mxu1 %v3997_v48  ;;  %v4061_v47 = vld [vmem:[#allocation5 + $0x6e8] ss:$16 sps:$4 sm:$0xff]   ;;  %v4066_v48 = vld [vmem:[#allocation5 + $0x704] ss:$16 sps:$4 sm:$0xff]  }
 0x1bd   :  { %2355 = vmatpush1.bf16.msra.mxu0 %v3992_v51  ;;  %2519 = vmatpush1.bf16.msra.mxu1 %v3995_v52  ;;  %v4064_v51 = vld [vmem:[#allocation5 + $0x700] ss:$16 sps:$4 sm:$0xff]   ;;  %v4067_v52 = vld [vmem:[#allocation5 + $0x708] ss:$16 sps:$4 sm:$0xff]  }
 0x1be   :  { %2356 = vmatprep.subr.bf16.mxu0 %v4000_v53  ;;  %2520 = vmatprep.subr.bf16.mxu1 %v4003_v54  ;;  %v4072_v53 = vld [vmem:[#allocation5 + $0x724] ss:$16 sps:$4 sm:$0xff]   ;;  %v4075_v54 = vld [vmem:[#allocation5 + $0x72c] ss:$16 sps:$4 sm:$0xff]  }
 0x1c1   :  { %2357 = vmatpush1.bf16.msra.mxu0 %v3998_v56  ;;  %2521 = vmatpush1.bf16.msra.mxu1 %v4001_v57  ;;  %v4078_v56 = vld [vmem:[#allocation5 + $0x744] ss:$16 sps:$4 sm:$0xff]   ;;  %v4081_v57 = vld [vmem:[#allocation5 + $0x74c] ss:$16 sps:$4 sm:$0xff]  }
 0x1c2   :  { %2358 = vmatprep.subr.bf16.mxu0 %v4006_v58  ;;  %2522 = vmatprep.subr.bf16.mxu1 %v4009_v59  ;;  %v4076_v58 = vld [vmem:[#allocation5 + $0x740] ss:$16 sps:$4 sm:$0xff]   ;;  %v4079_v59 = vld [vmem:[#allocation5 + $0x748] ss:$16 sps:$4 sm:$0xff]  }
 0x1c5   :  { %2359 = vmatpush1.bf16.msra.mxu0 %v4004_v62  ;;  %2523 = vmatpush1.bf16.msra.mxu1 %v4007_v63  ;;  %v4082_v62 = vld [vmem:[#allocation5 + $0x760] ss:$16 sps:$4 sm:$0xff]   ;;  %v4085_v63 = vld [vmem:[#allocation5 + $0x768] ss:$16 sps:$4 sm:$0xff]  }
 0x1c6   :  { %2360 = vmatprep.subr.bf16.mxu0 %v4012_v2  ;;  %2524 = vmatprep.subr.bf16.mxu1 %v4015_v3  ;;  %v4090_v2 = vld [vmem:[#allocation5 + $0x784] ss:$16 sps:$4 sm:$0xff]   ;;  %v4093_v3 = vld [vmem:[#allocation5 + $0x78c] ss:$16 sps:$4 sm:$0xff]  }
 0x1c9   :  { %2361 = vmatpush1.bf16.msra.mxu0 %v4010_v6  ;;  %2525 = vmatpush1.bf16.msra.mxu1 %v4013_v7  ;;  %v177_v6 = vsub.s32 6, %v4452_v9  ;;  %v4096_v7 = vld [vmem:[#allocation5 + $0x7a4] ss:$16 sps:$4 sm:$0xff]   ;;  %v4222_v9 = vld [vmem:[#allocation8 + $0x78] sm:$0xff]  }
 0x1ca   :  { %2371 = vmatprep.subr.bf16.mxu0 %v4018_v8  ;;  %2535 = vmatprep.subr.bf16.mxu1 %v4021_v12  ;;  %v4099_v8 = vld [vmem:[#allocation5 + $0x7ac] ss:$16 sps:$4 sm:$0xff]   ;;  %v4094_v12 = vld [vmem:[#allocation5 + $0x7a0] ss:$16 sps:$4 sm:$0xff]  }
 0x1cc   :  { %2363 = vmatmul.mubr.bf16.vlgmr.msra.gmra.mrb[4].mxu0 %v687_v13  ;;  %2527 = vmatmul.mubr.bf16.vlgmr.msra.gmra.mrb[12].mxu1 %v687_v13  ;;  %v178_v13 = vrot.slane %v4460_v11, %v177_v6  ;;  %v4114_v11 = vld [vmem:[#allocation7 + $0x4] ss:$8 sps:$4 sm:$0xff]  }
 0x1cd   :  { %2372 = vmatpush1.bf16.msra.mxu0 %v4016_v14  ;;  %2536 = vmatpush1.bf16.msra.mxu1 %v4019_v15  ;;  %v4102_v14 = vld [vmem:[#allocation5 + $0x7c4] ss:$16 sps:$4 sm:$0xff]   ;;  %v4105_v15 = vld [vmem:[#allocation5 + $0x7cc] ss:$16 sps:$4 sm:$0xff]  }
 0x1ce   :  { %2373 = vmatprep.subr.bf16.mxu0 %v4024_v16  ;;  %2537 = vmatprep.subr.bf16.mxu1 %v4027_v17  ;;  %v4100_v16 = vld [vmem:[#allocation5 + $0x7c0] ss:$16 sps:$4 sm:$0xff]   ;;  %v4103_v17 = vld [vmem:[#allocation5 + $0x7c8] ss:$16 sps:$4 sm:$0xff]  }
 0x1cf   :  { %2403 = vmatprep.mubr.bf16.mxu0 %v690_v46  ;;  %2567 = vmatprep.mubr.bf16.mxu1 %v690_v46  ;;  %v669_v46 = vadd.f32 %v4487_v45, %v178_v13  ;;  %v4115_v45 = vld [vmem:[#allocation7 + $0x10] ss:$8 sps:$4 sm:$0xff]   ;;  %v4217_v6 = vld [vmem:[#allocation8 + $0x20] sm:$0xff]  }
 0x1d1   :  { %2374 = vmatpush1.bf16.msra.mxu0 %v4022_v18  ;;  %2538 = vmatpush1.bf16.msra.mxu1 %v4025_v19  ;;  %v4108_v18 = vld [vmem:[#allocation5 + $0x7e4] ss:$16 sps:$4 sm:$0xff]   ;;  %v4111_v19 = vld [vmem:[#allocation5 + $0x7ec] ss:$16 sps:$4 sm:$0xff]  }
 0x1d2   :  { %2375 = vmatprep.subr.bf16.mxu0 %v4030_v20  ;;  %2539 = vmatprep.subr.bf16.mxu1 %v4033_v21  ;;  %v4106_v20 = vld [vmem:[#allocation5 + $0x7e0] ss:$16 sps:$4 sm:$0xff]   ;;  %v4109_v21 = vld [vmem:[#allocation5 + $0x7e8] ss:$16 sps:$4 sm:$0xff]  }
 0x1d5   :  { %2376 = vmatpush1.bf16.msra.mxu0 %v4028_v22  ;;  %2540 = vmatpush1.bf16.msra.mxu1 %v4031_v23  ;;  %v681_v22 = vmax.f32 %v669_v46, 0.0  ;;  %v4112_v23 = vld [vmem:[#allocation7] ss:$8 sps:$4 sm:$0xff]  }
 0x1d6   :  { %2377 = vmatprep.subr.bf16.mxu0 %v4036_v24  ;;  %2541 = vmatprep.subr.bf16.mxu1 %v4039_v26  ;;  %v4117_v26 = vld [vmem:[#allocation7 + $0x14] ss:$8 sps:$4 sm:$0xff]  }
 0x1d7   :  { %v689_v24 = vpack.c.bf16 %v681_v22, %v681_v22 }
 0x1d9   :  { %2378 = vmatpush1.bf16.msra.mxu0 %v4034_v27  ;;  %2542 = vmatpush1.bf16.msra.mxu1 %v4037_v28  ;;  %v4120_v27 = vld [vmem:[#allocation7 + $0x24] ss:$8 sps:$4 sm:$0xff]   ;;  %v4118_v28 = vld [vmem:[#allocation7 + $0x20] ss:$8 sps:$4 sm:$0xff]  }
 0x1da   :  { %2379 = vmatprep.subr.bf16.mxu0 %v4042_v29  ;;  %2543 = vmatprep.subr.bf16.mxu1 %v4045_v30  ;;  %v4123_v29 = vld [vmem:[#allocation7 + $0x34] ss:$8 sps:$4 sm:$0xff]   ;;  %v4121_v30 = vld [vmem:[#allocation7 + $0x30] ss:$8 sps:$4 sm:$0xff]  }
 0x1dd   :  { %2380 = vmatpush1.bf16.msra.mxu0 %v4040_v31  ;;  %2544 = vmatpush1.bf16.msra.mxu1 %v4043_v34  ;;  %v4126_v31 = vld [vmem:[#allocation7 + $0x44] ss:$8 sps:$4 sm:$0xff]   ;;  %v4124_v34 = vld [vmem:[#allocation7 + $0x40] ss:$8 sps:$4 sm:$0xff]  }
 0x1de   :  { %2381 = vmatprep.subr.bf16.mxu0 %v4048_v35  ;;  %2545 = vmatprep.subr.bf16.mxu1 %v4051_v36  ;;  %v4129_v35 = vld [vmem:[#allocation7 + $0x54] ss:$8 sps:$4 sm:$0xff]   ;;  %v4127_v36 = vld [vmem:[#allocation7 + $0x50] ss:$8 sps:$4 sm:$0xff]  }
 0x1e1   :  { %2382 = vmatpush1.bf16.msra.mxu0 %v4046_v37  ;;  %2546 = vmatpush1.bf16.msra.mxu1 %v4049_v38  ;;  %v4132_v37 = vld [vmem:[#allocation7 + $0x64] ss:$8 sps:$4 sm:$0xff]   ;;  %v4130_v38 = vld [vmem:[#allocation7 + $0x60] ss:$8 sps:$4 sm:$0xff]  }
 0x1e2   :  { %2383 = vmatprep.subr.bf16.mxu0 %v4054_v39  ;;  %2547 = vmatprep.subr.bf16.mxu1 %v4057_v40  ;;  %v4135_v39 = vld [vmem:[#allocation7 + $0x74] ss:$8 sps:$4 sm:$0xff]   ;;  %v4133_v40 = vld [vmem:[#allocation7 + $0x70] ss:$8 sps:$4 sm:$0xff]  }
 0x1e5   :  { %2384 = vmatpush1.bf16.msra.mxu0 %v4052_v41  ;;  %2548 = vmatpush1.bf16.msra.mxu1 %v4055_v42  ;;  %v4138_v41 = vld [vmem:[#allocation7 + $0x84] ss:$8 sps:$4 sm:$0xff]   ;;  %v4136_v42 = vld [vmem:[#allocation7 + $0x80] ss:$8 sps:$4 sm:$0xff]  }
 0x1e6   :  { %2385 = vmatprep.subr.bf16.mxu0 %v4060_v43  ;;  %2549 = vmatprep.subr.bf16.mxu1 %v4063_v44  ;;  %v4141_v43 = vld [vmem:[#allocation7 + $0x94] ss:$8 sps:$4 sm:$0xff]   ;;  %v4139_v44 = vld [vmem:[#allocation7 + $0x90] ss:$8 sps:$4 sm:$0xff]  }
 0x1e9   :  { %2386 = vmatpush1.bf16.msra.mxu0 %v4058_v1  ;;  %2550 = vmatpush1.bf16.msra.mxu1 %v4061_v47  ;;  %v4144_v1 = vld [vmem:[#allocation7 + $0xa4] ss:$8 sps:$4 sm:$0xff]   ;;  %v4142_v47 = vld [vmem:[#allocation7 + $0xa0] ss:$8 sps:$4 sm:$0xff]  }
 0x1ea   :  { %2387 = vmatprep.subr.bf16.mxu0 %v4066_v48  ;;  %2551 = vmatprep.subr.bf16.mxu1 %v4069_v50  ;;  %v4147_v48 = vld [vmem:[#allocation7 + $0xb4] ss:$8 sps:$4 sm:$0xff]   ;;  %v4145_v50 = vld [vmem:[#allocation7 + $0xb0] ss:$8 sps:$4 sm:$0xff]  }
 0x1ed   :  { %2388 = vmatpush1.bf16.msra.mxu0 %v4064_v51  ;;  %2552 = vmatpush1.bf16.msra.mxu1 %v4067_v52  ;;  %v4150_v51 = vld [vmem:[#allocation7 + $0xc4] ss:$8 sps:$4 sm:$0xff]   ;;  %v4148_v52 = vld [vmem:[#allocation7 + $0xc0] ss:$8 sps:$4 sm:$0xff]  }
 0x1ee   :  { %2389 = vmatprep.subr.bf16.mxu0 %v4072_v53  ;;  %2553 = vmatprep.subr.bf16.mxu1 %v4075_v54  ;;  %v4153_v53 = vld [vmem:[#allocation7 + $0xd4] ss:$8 sps:$4 sm:$0xff]   ;;  %v4151_v54 = vld [vmem:[#allocation7 + $0xd0] ss:$8 sps:$4 sm:$0xff]  }
 0x1f1   :  { %2390 = vmatpush1.bf16.msra.mxu0 %v4070_v55  ;;  %2554 = vmatpush1.bf16.msra.mxu1 %v4073_v33  ;;  %v4156_v55 = vld [vmem:[#allocation7 + $0xe4] ss:$8 sps:$4 sm:$0xff]   ;;  %v4154_v33 = vld [vmem:[#allocation7 + $0xe0] ss:$8 sps:$4 sm:$0xff]  }
 0x1f2   :  { %2391 = vmatprep.subr.bf16.mxu0 %v4078_v56  ;;  %2555 = vmatprep.subr.bf16.mxu1 %v4081_v57  ;;  %v4159_v56 = vld [vmem:[#allocation7 + $0xf4] ss:$8 sps:$4 sm:$0xff]   ;;  %v4157_v57 = vld [vmem:[#allocation7 + $0xf0] ss:$8 sps:$4 sm:$0xff]  }
 0x1f5   :  { %2392 = vmatpush1.bf16.msra.mxu0 %v4076_v58  ;;  %2556 = vmatpush1.bf16.msra.mxu1 %v4079_v59  ;;  %v4162_v58 = vld [vmem:[#allocation7 + $0x104] ss:$8 sps:$4 sm:$0xff]  }
 0x1f6   :  { %2393 = vmatprep.subr.bf16.mxu0 %v4084_v60  ;;  %2557 = vmatprep.subr.bf16.mxu1 %v4087_v61  ;;  %v4208_v59 = vld [vmem:[#allocation8 + $0x40] sm:$0xff]   ;;  %v4210_v61 = vld [vmem:[#allocation8 + $0x48] sm:$0xff]  }
 0x1f7   :  { %v4209_v60 = vld [vmem:[#allocation8] sm:$0xff]  }
 0x1f9   :  { %2394 = vmatpush1.bf16.msra.mxu0 %v4082_v62  ;;  %2558 = vmatpush1.bf16.msra.mxu1 %v4085_v63  ;;  %v4211_v62 = vld [vmem:[#allocation8 + $0x8] sm:$0xff]   ;;  %v4212_v63 = vld [vmem:[#allocation8 + $0x50] sm:$0xff]  }
 0x1fa   :  { %2395 = vmatprep.subr.bf16.mxu0 %v4090_v2  ;;  %2559 = vmatprep.subr.bf16.mxu1 %v4093_v3  ;;  %v4213_v2 = vld [vmem:[#allocation8 + $0x10] sm:$0xff]   ;;  %v4214_v3 = vld [vmem:[#allocation8 + $0x58] sm:$0xff]  }
 0x1fd   :  { %2396 = vmatpush1.bf16.msra.mxu0 %v4088_v4  ;;  %2560 = vmatpush1.bf16.msra.mxu1 %v4091_v5  ;;  %v4215_v4 = vld [vmem:[#allocation8 + $0x18] sm:$0xff]   ;;  %v4216_v5 = vld [vmem:[#allocation8 + $0x60] sm:$0xff]  }
 0x1fe   :  { %2397 = vmatprep.subr.bf16.mxu0 %v4096_v7  ;;  %2561 = vmatprep.subr.bf16.mxu1 %v4099_v8  ;;  %v4218_v7 = vld [vmem:[#allocation8 + $0x68] sm:$0xff]  }
 0x1ff   :  { %v4219_v8 = vld [vmem:[#allocation8 + $0x28] sm:$0xff]  }
 0x201   :  { %2398 = vmatpush1.bf16.msra.mxu0 %v4094_v12  ;;  %2562 = vmatpush1.bf16.msra.mxu1 %v4097_v32  ;;  %v4503_v12 = vld [vmem:[%s4543_s5 + $0x8] sm:$0xf] }
 0x202   :  { %2399 = vmatprep.subr.bf16.mxu0 %v4102_v14  ;;  %2563 = vmatprep.subr.bf16.mxu1 %v4105_v15  ;;  %v951_v32 = vrot.slane %v4503_v12, %v4455_v10  ;;  %v955_v13 = vrot.slane %v4503_v12, %v4463_v0  ;;  %v963_v14 = vrot.slane %v4503_v12, %v165_v49 }
 0x205   :  { %2400 = vmatpush1.bf16.msra.mxu0 %v4100_v16  ;;  %2564 = vmatpush1.bf16.msra.mxu1 %v4103_v17 }
 0x206   :  { %2401 = vmatprep.subr.bf16.mxu0 %v4108_v18  ;;  %2565 = vmatprep.subr.bf16.mxu1 %v4111_v19 }
 0x209   :  { %2402 = vmatpush1.bf16.msra.mxu0 %v4106_v20  ;;  %2566 = vmatpush1.bf16.msra.mxu1 %v4109_v21 }
 0x20a   :  { %2979 = vmatprep.subr.bf16.mxu0 %v4114_v11  ;;  %3658 = vmatprep.subr.bf16.mxu1 %v4208_v59  ;;  %v959_v59 = vrot.slane %v4503_v12, %v161_v25  ;;  %v4223_v25 = vld [vmem:[#allocation8 + $0x38] sm:$0xff]  }
 0x20c   :  { %2404 = vmatmul.mubr.bf16.vlgmr.msra.gmra.mrb[4].mxu0 %v689_v24  ;;  %2568 = vmatmul.mubr.bf16.vlgmr.msra.gmra.mrb[12].mxu1 %v689_v24 }
 0x20d   :  { %2980 = vmatpush1.bf16.msra.mxu0 %v4112_v23  ;;  %3659 = vmatpush3.bf16.msra.mxu1 %v4209_v60  ;;  %v4204_v60 = vld [vmem:[#allocation7 + $0x1e4] ss:$8 sps:$4 sm:$0xff]  }
 0x20e   :  { %2981 = vmatprep.subr.bf16.mxu0 %v4117_v26  ;;  %3660 = vmatprep.subr.bf16.mxu1 %v4210_v61  ;;  %v4202_v61 = vld [vmem:[#allocation7 + $0x1e0] ss:$8 sps:$4 sm:$0xff]  }
 0x211   :  { %2982 = vmatpush1.bf16.msra.mxu0 %v4115_v45  ;;  %3661 = vmatpush3.bf16.msra.mxu1 %v4211_v62 }
 0x212   :  { %2983 = vmatprep.subr.bf16.mxu0 %v4120_v27  ;;  %3662 = vmatprep.subr.bf16.mxu1 %v4212_v63  ;;  %v4207_v63 = vld [vmem:[#allocation7 + $0x1f4] ss:$8 sps:$4 sm:$0xff]  }
 0x215   :  { %2984 = vmatpush1.bf16.msra.mxu0 %v4118_v28  ;;  %3663 = vmatpush3.bf16.msra.mxu1 %v4213_v2  ;;  %v4160_v28 = vld [vmem:[#allocation7 + $0x100] ss:$8 sps:$4 sm:$0xff]   ;;  %v4205_v2 = vld [vmem:[#allocation7 + $0x1f0] ss:$8 sps:$4 sm:$0xff]  }
 0x216   :  { %2985 = vmatprep.subr.bf16.mxu0 %v4123_v29  ;;  %3664 = vmatprep.subr.bf16.mxu1 %v4214_v3 }
 0x219   :  { %2986 = vmatpush1.bf16.msra.mxu0 %v4121_v30  ;;  %3665 = vmatpush3.bf16.msra.mxu1 %v4215_v4  ;;  %v4165_v30 = vld [vmem:[#allocation7 + $0x114] ss:$8 sps:$4 sm:$0xff]  }
 0x21a   :  { %2987 = vmatprep.subr.bf16.mxu0 %v4126_v31  ;;  %3666 = vmatprep.subr.bf16.mxu1 %v4216_v5  ;;  %v4163_v31 = vld [vmem:[#allocation7 + $0x110] ss:$8 sps:$4 sm:$0xff]  }
 0x21b   :  { %v4220_v5 = vld [vmem:[#allocation8 + $0x70] sm:$0xff]  }
 0x21d   :  { %2988 = vmatpush1.bf16.msra.mxu0 %v4124_v34  ;;  %3667 = vmatpush3.bf16.msra.mxu1 %v4217_v6  ;;  %v4168_v34 = vld [vmem:[#allocation7 + $0x124] ss:$8 sps:$4 sm:$0xff]   ;;  %v4221_v6 = vld [vmem:[#allocation8 + $0x30] sm:$0xff]  }
 0x21e   :  { %2989 = vmatprep.subr.bf16.mxu0 %v4129_v35  ;;  %3668 = vmatprep.subr.bf16.mxu1 %v4218_v7  ;;  %v4166_v35 = vld [vmem:[#allocation7 + $0x120] ss:$8 sps:$4 sm:$0xff]   ;;  %v82_v7 = vld [vmem:[%s4543_s5 + $0xc] sm:$0x3] }
 0x21f   :  { %v2656_v12 = vrot.slane %v82_v7, %v4463_v0 }
 0x221   :  { %2990 = vmatpush1.bf16.msra.mxu0 %v4127_v36  ;;  %3669 = vmatpush3.bf16.msra.mxu1 %v4219_v8  ;;  %v4171_v36 = vld [vmem:[#allocation7 + $0x134] ss:$8 sps:$4 sm:$0xff]   ;;  %v2652_v8 = vrot.slane %v82_v7, %v4455_v10 }
 0x222   :  { %2991 = vmatprep.subr.bf16.mxu0 %v4132_v37  ;;  %v4169_v37 = vld [vmem:[#allocation7 + $0x130] ss:$8 sps:$4 sm:$0xff]   ;;  %3670 = vmatprep.subr.bf16.mxu1 %v4220_v5 }
 0x225   :  { %2992 = vmatpush1.bf16.msra.mxu0 %v4130_v38  ;;  %v4174_v38 = vld [vmem:[#allocation7 + $0x144] ss:$8 sps:$4 sm:$0xff]   ;;  %3671 = vmatpush3.bf16.msra.mxu1 %v4221_v6 }
 0x226   :  { %2993 = vmatprep.subr.bf16.mxu0 %v4135_v39  ;;  %v4172_v39 = vld [vmem:[#allocation7 + $0x140] ss:$8 sps:$4 sm:$0xff]   ;;  %3672 = vmatprep.subr.bf16.mxu1 %v4222_v9 }
 0x229   :  { %2994 = vmatpush1.bf16.msra.mxu0 %v4133_v40  ;;  %v4177_v40 = vld [vmem:[#allocation7 + $0x154] ss:$8 sps:$4 sm:$0xff]   ;;  %3673 = vmatpush3.bf16.msra.mxu1 %v4223_v25 }
 0x22a   :  { %2995 = vmatprep.subr.bf16.mxu0 %v4138_v41  ;;  %v4175_v41 = vld [vmem:[#allocation7 + $0x150] ss:$8 sps:$4 sm:$0xff]  }
 0x22d   :  { %2996 = vmatpush1.bf16.msra.mxu0 %v4136_v42  ;;  %v4180_v42 = vld [vmem:[#allocation7 + $0x164] ss:$8 sps:$4 sm:$0xff]  }
 0x22e   :  { %2997 = vmatprep.subr.bf16.mxu0 %v4141_v43  ;;  %v4178_v43 = vld [vmem:[#allocation7 + $0x160] ss:$8 sps:$4 sm:$0xff]  }
 0x231   :  { %2998 = vmatpush1.bf16.msra.mxu0 %v4139_v44  ;;  %v4183_v44 = vld [vmem:[#allocation7 + $0x174] ss:$8 sps:$4 sm:$0xff]  }
 0x232   :  { %2999 = vmatprep.subr.bf16.mxu0 %v4144_v1  ;;  %v4181_v1 = vld [vmem:[#allocation7 + $0x170] ss:$8 sps:$4 sm:$0xff]  }
 0x235   :  { %3000 = vmatpush1.bf16.msra.mxu0 %v4142_v47  ;;  %v4186_v47 = vld [vmem:[#allocation7 + $0x184] ss:$8 sps:$4 sm:$0xff]  }
 0x236   :  { %3001 = vmatprep.subr.bf16.mxu0 %v4147_v48  ;;  %v4184_v48 = vld [vmem:[#allocation7 + $0x180] ss:$8 sps:$4 sm:$0xff]  }
 0x239   :  { %3002 = vmatpush1.bf16.msra.mxu0 %v4145_v50  ;;  %v4189_v50 = vld [vmem:[#allocation7 + $0x194] ss:$8 sps:$4 sm:$0xff]  }
 0x23a   :  { %3003 = vmatprep.subr.bf16.mxu0 %v4150_v51  ;;  %v4187_v51 = vld [vmem:[#allocation7 + $0x190] ss:$8 sps:$4 sm:$0xff]  }
 0x23d   :  { %3004 = vmatpush1.bf16.msra.mxu0 %v4148_v52  ;;  %v4192_v52 = vld [vmem:[#allocation7 + $0x1a4] ss:$8 sps:$4 sm:$0xff]  }
 0x23e   :  { %3005 = vmatprep.subr.bf16.mxu0 %v4153_v53  ;;  %v4190_v53 = vld [vmem:[#allocation7 + $0x1a0] ss:$8 sps:$4 sm:$0xff]  }
 0x241   :  { %3006 = vmatpush1.bf16.msra.mxu0 %v4151_v54  ;;  %v4195_v54 = vld [vmem:[#allocation7 + $0x1b4] ss:$8 sps:$4 sm:$0xff]  }
 0x242   :  { %3007 = vmatprep.subr.bf16.mxu0 %v4156_v55  ;;  %v4193_v55 = vld [vmem:[#allocation7 + $0x1b0] ss:$8 sps:$4 sm:$0xff]  }
 0x245   :  { %3008 = vmatpush1.bf16.msra.mxu0 %v4154_v33  ;;  %v4198_v33 = vld [vmem:[#allocation7 + $0x1c4] ss:$8 sps:$4 sm:$0xff]  }
 0x246   :  { %3009 = vmatprep.subr.bf16.mxu0 %v4159_v56  ;;  %v4196_v56 = vld [vmem:[#allocation7 + $0x1c0] ss:$8 sps:$4 sm:$0xff]  }
 0x249   :  { %3010 = vmatpush1.bf16.msra.mxu0 %v4157_v57  ;;  %v4201_v57 = vld [vmem:[#allocation7 + $0x1d4] ss:$8 sps:$4 sm:$0xff]  }
 0x24a   :  { %3020 = vmatprep.subr.bf16.mxu0 %v4162_v58  ;;  %v4199_v58 = vld [vmem:[#allocation7 + $0x1d0] ss:$8 sps:$4 sm:$0xff]  }
 0x2df   :  { %v2405_v15 = vpop.f32.mrb[4].mxu0  ;;  %v4512_v16 = vpop.f32.mrb[12].mxu1 }
 0x2e0   :  { %v3680_v17 = vadd.f32 %v2405_v15, %v951_v32  ;;  %v2407_v46 = vpop.f32.mrb[5].mxu0  ;;  %v2571_v18 = vpop.f32.mrb[13].mxu1  ;;  %v3682_v62 = vadd.f32 %v4512_v16, %v959_v59 }
 0x2e1   :  { %v3681_v19 = vadd.f32 %v2407_v46, %v955_v13  ;;  %v3683_v20 = vadd.f32 %v2571_v18, %v963_v14  ;;  %v2409_v21 = vpop.f32.mrb[6].mxu0  ;;  %v2573_v22 = vpop.f32.mrb[14].mxu1 }
 0x2e2   :  { %v2576_v11 = vmax.f32 %v3680_v17, 0.0  ;;  %v2410_v23 = vpop.f32.mrb[7].mxu0  ;;  %v2574_v24 = vpop.f32.mrb[15].mxu1  ;;  %v2578_v3 = vmax.f32 %v3682_v62, 0.0  ;;  %v3641_v22 = vld [vmem:[%s4543_s5 + $0xe] ss:$0 sm:$0xff] }
 0x2e3   :  { %v2577_v26 = vmax.f32 %v3681_v19, 0.0  ;;  %v2579_v45 = vmax.f32 %v3683_v20, 0.0 }
 0x2e4   :  { %v2580_v29 = vpack.c.bf16 %v2576_v11, %v2576_v11  ;;  %v2582_v4 = vpack.c.bf16 %v2578_v3, %v2578_v3 }
 0x2e5   :  { %v2581_v27 = vpack.c.bf16 %v2577_v26, %v2577_v26  ;;  %v2583_v49 = vpack.c.bf16 %v2579_v45, %v2579_v45 }
 0x2e7   :  { %3011 = vmatprep.mubr.bf16.mxu0 %v2581_v27 }
 0x2e8   :  { %3012 = vmatmul.mubr.bf16.vlgmr.msra.gmra.mrb[8].mxu0 %v2580_v29 }
 0x2e9   :  { %3021 = vmatpush1.bf16.msra.mxu0 %v4160_v28  ;;  %3052 = vmatprep.mubr.bf16.mxu0 %v2583_v49 }
 0x2ea   :  { %3022 = vmatprep.subr.bf16.mxu0 %v4165_v30 }
 0x2ed   :  { %3023 = vmatpush1.bf16.msra.mxu0 %v4163_v31 }
 0x2ee   :  { %3024 = vmatprep.subr.bf16.mxu0 %v4168_v34 }
 0x2f1   :  { %3025 = vmatpush1.bf16.msra.mxu0 %v4166_v35 }
 0x2f2   :  { %3026 = vmatprep.subr.bf16.mxu0 %v4171_v36 }
 0x2f5   :  { %3027 = vmatpush1.bf16.msra.mxu0 %v4169_v37 }
 0x2f6   :  { %3028 = vmatprep.subr.bf16.mxu0 %v4174_v38 }
 0x2f9   :  { %3029 = vmatpush1.bf16.msra.mxu0 %v4172_v39 }
 0x2fa   :  { %3030 = vmatprep.subr.bf16.mxu0 %v4177_v40 }
 0x2fd   :  { %3031 = vmatpush1.bf16.msra.mxu0 %v4175_v41 }
 0x2fe   :  { %3032 = vmatprep.subr.bf16.mxu0 %v4180_v42 }
 0x301   :  { %3033 = vmatpush1.bf16.msra.mxu0 %v4178_v43 }
 0x302   :  { %3034 = vmatprep.subr.bf16.mxu0 %v4183_v44 }
 0x305   :  { %3035 = vmatpush1.bf16.msra.mxu0 %v4181_v1 }
 0x306   :  { %3036 = vmatprep.subr.bf16.mxu0 %v4186_v47 }
 0x309   :  { %3037 = vmatpush1.bf16.msra.mxu0 %v4184_v48 }
 0x30a   :  { %3038 = vmatprep.subr.bf16.mxu0 %v4189_v50 }
 0x30d   :  { %3039 = vmatpush1.bf16.msra.mxu0 %v4187_v51 }
 0x30e   :  { %3040 = vmatprep.subr.bf16.mxu0 %v4192_v52 }
 0x311   :  { %3041 = vmatpush1.bf16.msra.mxu0 %v4190_v53 }
 0x312   :  { %3042 = vmatprep.subr.bf16.mxu0 %v4195_v54 }
 0x315   :  { %3043 = vmatpush1.bf16.msra.mxu0 %v4193_v55 }
 0x316   :  { %3044 = vmatprep.subr.bf16.mxu0 %v4198_v33 }
 0x319   :  { %3045 = vmatpush1.bf16.msra.mxu0 %v4196_v56 }
 0x31a   :  { %3046 = vmatprep.subr.bf16.mxu0 %v4201_v57 }
 0x31d   :  { %3047 = vmatpush1.bf16.msra.mxu0 %v4199_v58 }
 0x31e   :  { %3048 = vmatprep.subr.bf16.mxu0 %v4204_v60 }
 0x321   :  { %3049 = vmatpush1.bf16.msra.mxu0 %v4202_v61 }
 0x322   :  { %3050 = vmatprep.subr.bf16.mxu0 %v4207_v63 }
 0x325   :  { %3051 = vmatpush1.bf16.msra.mxu0 %v4205_v2 }
 0x328   :  { %3053 = vmatmul.mubr.bf16.vlgmr.msra.gmra.mrb[8].mxu0 %v2582_v4 }
 0x3fb   :  { %v3054_v32 = vpop.f32.mrb[8].mxu0 }
 0x3fc   :  { %v3684_v13 = vadd.f32 %v3054_v32, %v2652_v8  ;;  %v3056_v14 = vpop.f32.mrb[9].mxu0 }
 0x3fd   :  { %v3685_v15 = vadd.f32 %v3056_v14, %v2656_v12  ;;  %v3058_v16 = vpop.f32.mrb[10].mxu0 }
 0x3fe   :  { %v3061_v17 = vmax.f32 %v3684_v13, 0.0  ;;  %v3059_v46 = vpop.f32.mrb[11].mxu0 }
 0x3ff   :  { %v3062_v18 = vmax.f32 %v3685_v15, 0.0 }
 0x400   :  { %v3063_v20 = vpack.c.bf16 %v3061_v17, %v3061_v17 }
 0x401   :  { %v3064_v19 = vpack.c.bf16 %v3062_v18, %v3062_v18 }
 0x403   :  { %3231 = vmatprep.mubr.bf16.mxu1 %v3064_v19 }
 0x404   :  { %3232 = vmatmul.mubr.bf16.vlgmr.msra.gmra.mrb[16].mxu1 %v3063_v20 }
 0x4d7   :  { %v3674_v21 = vpop.f32.mrb[16].mxu1 }
 0x4d8   :  { %v3675_v10 = vpop.f32.mrb[17].mxu1 }
 0x4d9   :  { %v3676_v0 = vadd.f32 %v3675_v10, %v3674_v21  ;;  %v3677_v11 = vpop.f32.mrb[18].mxu1 }
 0x4da   :  { %v3678_v23 = vpop.f32.mrb[19].mxu1 }
 0x4db   :  { %v3234_v24 = vadd.f32 %v3676_v0, %v3641_v22 }
 0x4dd   :  { %3239 = vst [vmem:[#allocation10] sm:$0xff] %v3234_v24 }
 0x4de   :  { %4323 = shalt.err (!%p4320_p8)
}
 0x4df   :  { %s4324_s5 = scalar_lea.hbm %s4544_s6, 128 }
 0x4e0   :  { %p4325_p9 = scmp.ne.s32.totalorder %s4544_s6, %s4324_s5  ;;  %p4328_p10 = scmp.lt.u32.totalorder %s4324_s5, %s4544_s6 }
 0x4e2   :  { %p4330_p11 = pnand %p4328_p10, %p4325_p9 }
 0x4e4   :  { %4333 = shalt.err (!%p4330_p11)
}
 0x4e5   :  { %3249 = dma.vmem_to_hbm [thread:$0]  %s3247_s1, 128, %s4544_s6, [#allocation4]  }
 0x4e6   :  { %4340 = dma.done.wait [#allocation4], 128  }
 0x4e7   :  { %4341 = vsyncadd [#allocation4], 4294967168 }
 0x4e8   :  { %3253 = vsyncpa [#allocation3], 1 }
 0x4e9   :  { %3254 = vsyncpa [#allocation6], 1 }
 0x4ea   :  { %3255 = vsyncpa [#allocation9], 1 }
 0x4eb   :  { %3256 = vsyncpa [#allocation4], 1 }

</bundles_post_ra>
